<compile_context>
chip_gen: v7x
topology: tpu7x:2x2x1
jax: 0.10.0
libtpu: 0.0.40
codegen_flags: <defaults>
</compile_context>

<pallas_src>
import functools

import numpy as np
import jax
import jax.numpy as jnp
from jax.experimental import pallas as pl
from jax.experimental.pallas import tpu as pltpu

_LN_EPS = 1e-5
_VMEM_LIMIT_BYTES = 48 * 1024 * 1024   # < v7x 64 MiB physical; > v5e 16 MiB default


# ----------------------------- in-kernel helpers -----------------------------

def _erf_poly(z):
    # Abramowitz & Stegun 7.1.26 erf approximation (|err| < 1.5e-7) -- realizes
    # PyTorch's exact (erf-based) nn.GELU with ops that lower on Mosaic.
    a1, a2, a3, a4, a5 = (0.254829592, -0.284496736, 1.421413741,
                          -1.453152027, 1.061405429)
    p = 0.3275911
    s = jnp.where(z >= 0.0, 1.0, -1.0)
    za = jnp.abs(z)
    # approx reciprocal runs on the EUP slot, freeing VALU issue slots.
    t = pl.reciprocal(1.0 + p * za, approx=True)
    poly = ((((a5 * t + a4) * t + a3) * t + a2) * t + a1) * t
    return s * (1.0 - poly * jnp.exp(-za * za))


def _gelu_exact(x):
    return 0.5 * x * (1.0 + _erf_poly(x * 0.7071067811865476))


def _layer_norm(x, w, b):
    mu = jnp.mean(x, axis=-1, keepdims=True)
    var = jnp.mean(jnp.square(x - mu), axis=-1, keepdims=True)
    return (x - mu) * jax.lax.rsqrt(var + _LN_EPS) * w + b


# ------------------------------ LRU block kernel ------------------------------

def _lru_block_kernel(nlev,
                      x_ref, m_ref,
                      lpr_ref, lpi_ref,
                      win_ref, bin_ref,
                      wout_ref, bout_ref,
                      ln1w_ref, ln1b_ref,
                      w1_ref, b1_ref, w2_ref, b2_ref,
                      ln2w_ref, ln2b_ref,
                      o_ref):
    """One LRUBlock (LRULayer + PositionwiseFeedForward) for Bb batch rows."""
    Bb, Lp, D = x_ref.shape
    H = lpr_ref.shape[-1]
    M = Bb * Lp

    x = x_ref[...].reshape(M, D)          # f32 residual
    m = m_ref[...].reshape(M, 1)          # 0/1 padding mask

    # ---- fused complex in_proj: one bf16 MXU matmul producing [Re | Im].
    #      gamma is pre-folded into win/bin at parameter-prep time.
    h_cat = (jnp.dot(x.astype(jnp.bfloat16), win_ref[...],
                     preferred_element_type=jnp.float32) + bin_ref[...])
    hr = h_cat[:, :H]
    hi = h_cat[:, H:]

    # ---- log2 parallel LRU scan (levels unrolled at trace time).
    # At level i (block length l = 2^(i+1)) only the UPPER half of each block
    # changes: rows [half, l) receive lambda^(1..half) * h[boundary] * mask at
    # the boundary row (block pos half-1) -- exactly LRULayer.lru_parallel.
    # Pure VPU: no zero tables, FMAs only on the upper halves.
    lpr_all = lpr_ref[...]                # (Lp//2, H): Re(lambda^k), k = 1..Lp/2
    lpi_all = lpi_ref[...]
    for i in range(nlev):
        l = 2 ** (i + 1)
        half = l // 2
        nblk = M // l
        hr_b = hr.reshape(nblk, l, H)
        hi_b = hi.reshape(nblk, l, H)
        gate = m.reshape(nblk, l, 1)[:, half - 1:half, :]     # (nblk, 1, 1)
        br = hr_b[:, half - 1:half, :] * gate                 # (nblk, 1, H)
        bi = hi_b[:, half - 1:half, :] * gate
        lr = lpr_all[:half][None]                             # (1, half, H)
        li = lpi_all[:half][None]
        up_r = hr_b[:, half:, :] + lr * br - li * bi
        up_i = hi_b[:, half:, :] + lr * bi + li * br
        hr = jnp.concatenate([hr_b[:, :half, :], up_r], axis=1).reshape(M, H)
        hi = jnp.concatenate([hi_b[:, :half, :], up_i], axis=1).reshape(M, H)

    # ---- fused out_proj (real part): [hr | hi] @ [Wor^T ; -Woi^T] + bor.
    h2 = jnp.concatenate([hr, hi], axis=-1).astype(jnp.bfloat16)   # (M, 2H)
    y = (jnp.dot(h2, wout_ref[...], preferred_element_type=jnp.float32)
         + bout_ref[...])
    x1 = _layer_norm(y + x, ln1w_ref[...], ln1b_ref[...])

    # ---- FFN(GELU) + LN2 over the whole folded (M, .) slab (no per-row loop).
    hff = (jnp.dot(x1.astype(jnp.bfloat16), w1_ref[...],
                   preferred_element_type=jnp.float32) + b1_ref[...])
    hff = _gelu_exact(hff)
    y2 = (jnp.dot(hff.astype(jnp.bfloat16), w2_ref[...],
                  preferred_element_type=jnp.float32) + b2_ref[...])
    out = _layer_norm(y2 + x1, ln2w_ref[...], ln2b_ref[...])
    o_ref[...] = out.reshape(Bb, Lp, D)


def _pick_block_batch(B, Lp):
    bb = max(1, 256 // max(Lp, 1))      # target ~256 matmul rows per grid step
    bb = min(bb, B)
    if B >= 2:                          # keep a >=2-wide parallel grid axis
        bb = min(bb, pl.cdiv(B, 2))     # (v7x has 2 TensorCores)
    return max(bb, 1)


def lru_block_apply(x, mask3, weights, nlev):
    B, Lp, D = x.shape
    bb = _pick_block_batch(B, Lp)
    grid = (pl.cdiv(B, bb),)

    in_specs = [pl.BlockSpec((bb, Lp, D), lambda b: (b, 0, 0)),   # activations
                pl.BlockSpec((bb, Lp, 1), lambda b: (b, 0, 0))]   # padding mask
    in_specs += [pl.BlockSpec(w.shape, lambda b: (0, 0)) for w in weights]

    return pl.pallas_call(
        functools.partial(_lru_block_kernel, nlev),
        out_shape=jax.ShapeDtypeStruct((B, Lp, D), jnp.float32),
        grid=grid,
        in_specs=in_specs,
        out_specs=pl.BlockSpec((bb, Lp, D), lambda b: (b, 0, 0)),
        compiler_params=pltpu.CompilerParams(
            dimension_semantics=("parallel",),
            vmem_limit_bytes=_VMEM_LIMIT_BYTES),
    )(x, mask3, *weights)


# ------------------------------- scoring kernel -------------------------------

def _scores_kernel(x_ref, e_ref, b_ref, o_ref):
    # x_ref: (tm, D) f32 activations; e_ref: (tn, D) bf16 row-major embedding
    # tile.  Contract over D with dot_general -- E^T is never materialized.
    acc = jax.lax.dot_general(
        x_ref[...].astype(jnp.bfloat16), e_ref[...],
        dimension_numbers=(((1,), (1,)), ((), ())),
        preferred_element_type=jnp.float32)
    o_ref[...] = acc + b_ref[...]


def scores_apply(x, emb_bf16, bias):
    B, L, D = x.shape
    V = emb_bf16.shape[0]
    M = B * L
    flat = x.reshape(M, D)

    # wide row tile cuts how often the embedding table is re-streamed from HBM
    tm = 512 if M >= 512 else (256 if M >= 256 else M)
    tn = 512 if V >= 512 else V        # lane-dense multiple of 128 once V >= 512
    grid = (pl.cdiv(M, tm), pl.cdiv(V, tn))

    # TODO(synk): emitting bf16 scores (or fusing the downstream softmax/top-k)
    #             would halve the (M, V) writeback if numerics allow.
    out = pl.pallas_call(
        _scores_kernel,
        out_shape=jax.ShapeDtypeStruct((M, V), jnp.float32),
        grid=grid,
        in_specs=[pl.BlockSpec((tm, D), lambda i, j: (i, 0)),
                  pl.BlockSpec((tn, D), lambda i, j: (j, 0)),
                  pl.BlockSpec((1, tn), lambda i, j: (0, j))],
        out_specs=pl.BlockSpec((tm, tn), lambda i, j: (i, j)),
        compiler_params=pltpu.CompilerParams(
            dimension_semantics=("parallel", "parallel"),
            vmem_limit_bytes=_VMEM_LIMIT_BYTES),
    )(flat, emb_bf16, bias.reshape(1, V))
    return out.reshape(B, L, V)


# --------------------- one-time parameter preparation -------------------------

def prepare_block_weights(p, Lp):
    """Parameter-load-time fusion / layout / bf16 prep for one LRUBlock."""
    row = lambda v: v.reshape(1, -1)
    # Compact lambda-power table: row k-1 holds lambda^k, k = 1..Lp/2 (the scan
    # never needs a higher power).  lambda = exp(-nu + i*theta).
    half_max = max(Lp // 2, 1)
    k = jnp.arange(1, half_max + 1, dtype=jnp.float32)[:, None]
    decay = jnp.exp(-k * p["nu"][None, :])
    ang = k * p["theta"][None, :]
    lpr = decay * jnp.cos(ang)
    lpi = decay * jnp.sin(ang)

    g2 = jnp.concatenate([p["gamma"], p["gamma"]])[None, :]              # (1, 2H)
    win_cat = jnp.concatenate([p["win_r"].T, p["win_i"].T], axis=1) * g2  # (D, 2H)
    bin_cat = jnp.concatenate([p["bin_r"], p["bin_i"]])[None, :] * g2     # (1, 2H)
    wout_cat = jnp.concatenate([p["wout_r"].T, -p["wout_i"].T], axis=0)   # (2H, D)

    return [
        lpr, lpi,
        win_cat.astype(jnp.bfloat16), bin_cat,
        wout_cat.astype(jnp.bfloat16), row(p["bout_r"]),
        row(p["ln1_w"]), row(p["ln1_b"]),
        p["w1"].T.astype(jnp.bfloat16), row(p["b1"]),
        p["w2"].T.astype(jnp.bfloat16), row(p["b2"]),
        row(p["ln2_w"]), row(p["ln2_b"]),
    ]


def prepare_model(params, embedding_weight, seq_len):
    nlev = int(np.ceil(np.log2(seq_len))) if seq_len > 1 else 0
    Lp = 2 ** nlev
    return dict(
        seq_len=seq_len, nlev=nlev, Lp=Lp,
        blocks=[prepare_block_weights(p, Lp) for p in params["blocks"]],
        bias=params["bias"],
        emb_bf16=embedding_weight.astype(jnp.bfloat16),
    )


# ------------------------------- model forward --------------------------------

def lru_model_forward(x, mask, prepared):
    """LRUModel.forward, dataset_code != 'xlong' path.  Returns (scores, x)."""
    B, seq_len, D = x.shape
    assert seq_len == prepared["seq_len"]
    Lp, nlev = prepared["Lp"], prepared["nlev"]

    xp = jnp.pad(x, ((0, 0), (Lp - seq_len, 0), (0, 0)))          # pad seq at front
    mp = jnp.pad(mask.astype(jnp.float32), ((0, 0), (Lp - seq_len, 0)))
    m3 = mp[:, :, None]                                           # (B, Lp, 1)

    h = xp
    for w in prepared["blocks"]:
        h = lru_block_apply(h, m3, w, nlev)
    h = h[:, -seq_len:]

    scores = scores_apply(h, prepared["emb_bf16"], prepared["bias"])
    return scores, h


# ----------------------------- parameter creation -----------------------------

def _linear_init(key, out_f, in_f):
    kw, kb = jax.random.split(key)
    bound = 1.0 / np.sqrt(in_f)
    w = jax.random.uniform(kw, (out_f, in_f), jnp.float32, -bound, bound)
    b = jax.random.uniform(kb, (out_f,), jnp.float32, -bound, bound)
    return w, b


def init_params(key, d_model, num_blocks, num_items, r_min=0.8, r_max=0.99):
    H, F = 2 * d_model, 4 * d_model
    blocks = []
    for _ in range(num_blocks):
        key, k1, k2, k3, k4, k5, k6 = jax.random.split(key, 7)
        u1 = jax.random.uniform(k1, (H,), jnp.float32)
        u2 = jax.random.uniform(k2, (H,), jnp.float32)
        nu_log = jnp.log(-0.5 * jnp.log(u1 * (r_max ** 2 - r_min ** 2) + r_min ** 2))
        theta_log = jnp.log(u2 * 2.0 * np.pi)
        nu = jnp.exp(nu_log)
        theta = jnp.exp(theta_log)
        gamma = jnp.sqrt(1.0 - jnp.exp(-2.0 * nu))   # = exp(gamma_log)

        # torch .to(cfloat) produces complex weights with zero imaginary part.
        win_r, bin_r = _linear_init(k3, H, d_model)
        wout_r, bout_r = _linear_init(k4, d_model, H)
        w1, b1 = _linear_init(k5, F, d_model)
        w2, b2 = _linear_init(k6, d_model, F)
        blocks.append(dict(
            nu=nu, theta=theta, gamma=gamma,
            win_r=win_r, win_i=jnp.zeros_like(win_r),
            bin_r=bin_r, bin_i=jnp.zeros_like(bin_r),
            wout_r=wout_r, wout_i=jnp.zeros_like(wout_r),
            bout_r=bout_r,
            ln1_w=jnp.ones((d_model,), jnp.float32),
            ln1_b=jnp.zeros((d_model,), jnp.float32),
            w1=w1, b1=b1, w2=w2, b2=b2,
            ln2_w=jnp.ones((d_model,), jnp.float32),
            ln2_b=jnp.zeros((d_model,), jnp.float32),
        ))
    return dict(blocks=blocks,
                bias=jnp.zeros((num_items + 1,), jnp.float32))


# ------------------------- pure-JAX reference (check) --------------------------

def _ref_layer_norm(x, w, b):
    mu = jnp.mean(x, axis=-1, keepdims=True)
    var = jnp.mean(jnp.square(x - mu), axis=-1, keepdims=True)
    return (x - mu) / jnp.sqrt(var + _LN_EPS) * w + b


def _reference_block(x, mask, p, nlev):
    B, Lp, D = x.shape
    H = p["nu"].shape[0]
    lamb0 = jnp.exp(jax.lax.complex(-p["nu"], p["theta"]))          # (H,)
    w_in = jax.lax.complex(p["win_r"], p["win_i"])                  # (H, D)
    b_in = jax.lax.complex(p["bin_r"], p["bin_i"])
    h = (x.astype(jnp.complex64) @ w_in.T + b_in) * p["gamma"]
    hh = h.reshape(B * Lp, H)
    mm = mask.reshape(B * Lp)
    lamb = lamb0[None, :]
    for i in range(1, nlev + 1):
        l = 2 ** i
        hb = hh.reshape(-1, l, H)
        mb = mm.reshape(-1, l)
        h1, h2 = hb[:, :l // 2], hb[:, l // 2:]
        if i > 1:
            lamb = jnp.concatenate([lamb, lamb * lamb[-1]], axis=0)
        h2 = h2 + lamb * h1[:, -1:] * mb[:, l // 2 - 1:l // 2][..., None]
        hh = jnp.concatenate([h1, h2], axis=1).reshape(B * Lp, H)
    h = hh.reshape(B, Lp, H)
    w_out = jax.lax.complex(p["wout_r"], p["wout_i"])               # (D, H)
    y = jnp.real(h @ w_out.T) + p["bout_r"]
    x1 = _ref_layer_norm(y + x, p["ln1_w"], p["ln1_b"])
    hff = jax.nn.gelu(x1 @ p["w1"].T + p["b1"], approximate=False)
    y2 = hff @ p["w2"].T + p["b2"]
    return _ref_layer_norm(y2 + x1, p["ln2_w"], p["ln2_b"])


def reference_forward(x, embedding_weight, mask, params):
    B, seq_len, D = x.shape
    nlev = int(np.ceil(np.log2(seq_len))) if seq_len > 1 else 0
    Lp = 2 ** nlev
    xp = jnp.pad(x, ((0, 0), (Lp - seq_len, 0), (0, 0)))
    mp = jnp.pad(mask.astype(jnp.float32), ((0, 0), (Lp - seq_len, 0)))
    h = xp
    for p in params["blocks"]:
        h = _reference_block(h, mp, p, nlev)
    h = h[:, -seq_len:]
    scores = jnp.einsum("bld,vd->blv", h, embedding_weight) + params["bias"]
    return scores, h


# ------------------------------------ main -------------------------------------

if __name__ == "__main__":
    key = jax.random.PRNGKey(0)
    kx, ke, km, kp = jax.random.split(key, 4)

    B, seq_len, d_model = 2, 6, 32          # seq pads to Lp = 8 inside the model
    num_blocks, num_items = 2, 50

    x = jax.random.normal(kx, (B, seq_len, d_model), jnp.float32)
    embedding_weight = 0.02 * jax.random.normal(
        ke, (num_items + 1, d_model), jnp.float32)
    mask = (jax.random.uniform(km, (B, seq_len)) > 0.2).astype(jnp.float32)
    params = init_params(kp, d_model, num_blocks, num_items)

    prepared = prepare_model(params, embedding_weight, seq_len)   # one-time prep
    scores, feats = lru_model_forward(x, mask, prepared)
    jax.block_until_ready((scores, feats))

    assert scores.shape == (B, seq_len, num_items + 1)
    assert feats.shape == (B, seq_len, d_model)
    assert bool(jnp.all(jnp.isfinite(scores)))
    assert bool(jnp.all(jnp.isfinite(feats)))

    # correctness check vs. a pure-JAX f32 reference (loose tol: bf16 MXU ops)
    with jax.default_matmul_precision("float32"):
        ref_scores, ref_feats = reference_forward(x, embedding_weight, mask, params)
    np.testing.assert_allclose(np.asarray(feats), np.asarray(ref_feats),
                               rtol=1e-1, atol=1e-1)
    np.testing.assert_allclose(np.asarray(scores), np.asarray(ref_scores),
                               rtol=1e-1, atol=1e-1)

    print("KERNEL_OK")
</pallas_src>

<mosaic_0001>
module attributes {stable_mosaic.version = 11 : i64} {
  func.func @_lru_block_kernel(%arg0: i32, %arg1: memref<1x8x32xf32, #tpu.memory_space<vmem>>, %arg2: memref<1x8x1xf32, #tpu.memory_space<vmem>>, %arg3: memref<4x64xf32, #tpu.memory_space<vmem>>, %arg4: memref<4x64xf32, #tpu.memory_space<vmem>>, %arg5: memref<32x128xbf16, #tpu.memory_space<vmem>>, %arg6: memref<1x128xf32, #tpu.memory_space<vmem>>, %arg7: memref<128x32xbf16, #tpu.memory_space<vmem>>, %arg8: memref<1x32xf32, #tpu.memory_space<vmem>>, %arg9: memref<1x32xf32, #tpu.memory_space<vmem>>, %arg10: memref<1x32xf32, #tpu.memory_space<vmem>>, %arg11: memref<32x128xbf16, #tpu.memory_space<vmem>>, %arg12: memref<1x128xf32, #tpu.memory_space<vmem>>, %arg13: memref<128x32xbf16, #tpu.memory_space<vmem>>, %arg14: memref<1x32xf32, #tpu.memory_space<vmem>>, %arg15: memref<1x32xf32, #tpu.memory_space<vmem>>, %arg16: memref<1x32xf32, #tpu.memory_space<vmem>>, %arg17: memref<1x8x32xf32, #tpu.memory_space<vmem>>) attributes {dimension_semantics = [#tpu.dimension_semantics<parallel>], iteration_bounds = array<i64: 2>, scalar_prefetch = 0 : i64, scratch_operands = 0 : i64, tpu.core_type = #tpu.core_type<tc>, window_params = [{transform_indices = @transform_0, window_bounds = array<i64: 1, 8, 32>}, {transform_indices = @transform_1, window_bounds = array<i64: 1, 8, 1>}, {pipeline_mode = #tpu.pipeline_mode<synchronous>, transform_indices = @transform_2, window_bounds = array<i64: 4, 64>}, {pipeline_mode = #tpu.pipeline_mode<synchronous>, transform_indices = @transform_3, window_bounds = array<i64: 4, 64>}, {pipeline_mode = #tpu.pipeline_mode<synchronous>, transform_indices = @transform_4, window_bounds = array<i64: 32, 128>}, {pipeline_mode = #tpu.pipeline_mode<synchronous>, transform_indices = @transform_5, window_bounds = array<i64: 1, 128>}, {pipeline_mode = #tpu.pipeline_mode<synchronous>, transform_indices = @transform_6, window_bounds = array<i64: 128, 32>}, {pipeline_mode = #tpu.pipeline_mode<synchronous>, transform_indices = @transform_7, window_bounds = array<i64: 1, 32>}, {pipeline_mode = #tpu.pipeline_mode<synchronous>, transform_indices = @transform_8, window_bounds = array<i64: 1, 32>}, {pipeline_mode = #tpu.pipeline_mode<synchronous>, transform_indices = @transform_9, window_bounds = array<i64: 1, 32>}, {pipeline_mode = #tpu.pipeline_mode<synchronous>, transform_indices = @transform_10, window_bounds = array<i64: 32, 128>}, {pipeline_mode = #tpu.pipeline_mode<synchronous>, transform_indices = @transform_11, window_bounds = array<i64: 1, 128>}, {pipeline_mode = #tpu.pipeline_mode<synchronous>, transform_indices = @transform_12, window_bounds = array<i64: 128, 32>}, {pipeline_mode = #tpu.pipeline_mode<synchronous>, transform_indices = @transform_13, window_bounds = array<i64: 1, 32>}, {pipeline_mode = #tpu.pipeline_mode<synchronous>, transform_indices = @transform_14, window_bounds = array<i64: 1, 32>}, {pipeline_mode = #tpu.pipeline_mode<synchronous>, transform_indices = @transform_15, window_bounds = array<i64: 1, 32>}, {transform_indices = @transform_16, window_bounds = array<i64: 1, 8, 32>}]} {
    %c0 = arith.constant 0 : index
    %c0_0 = arith.constant 0 : index
    %c0_1 = arith.constant 0 : index
    %0 = vector.load %arg1[%c0, %c0_0, %c0_1] : memref<1x8x32xf32, #tpu.memory_space<vmem>>, vector<1x8x32xf32>
    %1 = vector.shape_cast %0 : vector<1x8x32xf32> to vector<8x32xf32>
    %c0_2 = arith.constant 0 : index
    %c0_3 = arith.constant 0 : index
    %c0_4 = arith.constant 0 : index
    %2 = vector.load %arg2[%c0_2, %c0_3, %c0_4] : memref<1x8x1xf32, #tpu.memory_space<vmem>>, vector<1x8x1xf32>
    %3 = vector.shape_cast %2 : vector<1x8x1xf32> to vector<8x1xf32>
    %4 = arith.truncf %1 : vector<8x32xf32> to vector<8x32xbf16>
    %c0_5 = arith.constant 0 : index
    %c0_6 = arith.constant 0 : index
    %5 = vector.load %arg5[%c0_5, %c0_6] : memref<32x128xbf16, #tpu.memory_space<vmem>>, vector<32x128xbf16>
    %cst = arith.constant dense<0.000000e+00> : vector<8x128xf32>
    %6 = tpu.matmul %4, %5, %cst {dimension_numbers = #tpu.dot_dimension_numbers<[1], [0], [0], [1], [0, 0, 1, 1], [], []>} : vector<8x32xbf16>, vector<32x128xbf16>, vector<8x128xf32> -> vector<8x128xf32>
    %c0_7 = arith.constant 0 : index
    %c0_8 = arith.constant 0 : index
    %7 = vector.load %arg6[%c0_7, %c0_8] : memref<1x128xf32, #tpu.memory_space<vmem>>, vector<1x128xf32>
    %8 = vector.broadcast %7 : vector<1x128xf32> to vector<8x128xf32>
    %9 = arith.addf %6, %8 : vector<8x128xf32>
    %10 = vector.extract_strided_slice %9 {offsets = [0, 0], sizes = [8, 64], strides = [1, 1]} : vector<8x128xf32> to vector<8x64xf32>
    %11 = vector.extract_strided_slice %9 {offsets = [0, 64], sizes = [8, 64], strides = [1, 1]} : vector<8x128xf32> to vector<8x64xf32>
    %c0_9 = arith.constant 0 : index
    %c0_10 = arith.constant 0 : index
    %12 = vector.load %arg3[%c0_9, %c0_10] : memref<4x64xf32, #tpu.memory_space<vmem>>, vector<4x64xf32>
    %c0_11 = arith.constant 0 : index
    %c0_12 = arith.constant 0 : index
    %13 = vector.load %arg4[%c0_11, %c0_12] : memref<4x64xf32, #tpu.memory_space<vmem>>, vector<4x64xf32>
    %14 = vector.shape_cast %10 : vector<8x64xf32> to vector<4x2x64xf32>
    %15 = vector.shape_cast %11 : vector<8x64xf32> to vector<4x2x64xf32>
    %16 = vector.shape_cast %3 : vector<8x1xf32> to vector<4x2x1xf32>
    %17 = vector.extract_strided_slice %16 {offsets = [0, 0, 0], sizes = [4, 1, 1], strides = [1, 1, 1]} : vector<4x2x1xf32> to vector<4x1x1xf32>
    %18 = vector.extract_strided_slice %14 {offsets = [0, 0, 0], sizes = [4, 1, 64], strides = [1, 1, 1]} : vector<4x2x64xf32> to vector<4x1x64xf32>
    %19 = vector.broadcast %17 : vector<4x1x1xf32> to vector<4x1x64xf32>
    %20 = arith.mulf %18, %19 : vector<4x1x64xf32>
    %21 = vector.extract_strided_slice %15 {offsets = [0, 0, 0], sizes = [4, 1, 64], strides = [1, 1, 1]} : vector<4x2x64xf32> to vector<4x1x64xf32>
    %22 = vector.broadcast %17 : vector<4x1x1xf32> to vector<4x1x64xf32>
    %23 = arith.mulf %21, %22 : vector<4x1x64xf32>
    %24 = vector.extract_strided_slice %12 {offsets = [0, 0], sizes = [1, 64], strides = [1, 1]} : vector<4x64xf32> to vector<1x64xf32>
    %25 = vector.shape_cast %24 : vector<1x64xf32> to vector<1x1x64xf32>
    %26 = vector.extract_strided_slice %13 {offsets = [0, 0], sizes = [1, 64], strides = [1, 1]} : vector<4x64xf32> to vector<1x64xf32>
    %27 = vector.shape_cast %26 : vector<1x64xf32> to vector<1x1x64xf32>
    %28 = vector.extract_strided_slice %14 {offsets = [0, 1, 0], sizes = [4, 1, 64], strides = [1, 1, 1]} : vector<4x2x64xf32> to vector<4x1x64xf32>
    %29 = vector.broadcast %25 : vector<1x1x64xf32> to vector<4x1x64xf32>
    %30 = arith.mulf %29, %20 : vector<4x1x64xf32>
    %31 = arith.addf %28, %30 : vector<4x1x64xf32>
    %32 = vector.broadcast %27 : vector<1x1x64xf32> to vector<4x1x64xf32>
    %33 = arith.mulf %32, %23 : vector<4x1x64xf32>
    %34 = arith.subf %31, %33 : vector<4x1x64xf32>
    %35 = vector.extract_strided_slice %15 {offsets = [0, 1, 0], sizes = [4, 1, 64], strides = [1, 1, 1]} : vector<4x2x64xf32> to vector<4x1x64xf32>
    %36 = vector.broadcast %25 : vector<1x1x64xf32> to vector<4x1x64xf32>
    %37 = arith.mulf %36, %23 : vector<4x1x64xf32>
    %38 = arith.addf %35, %37 : vector<4x1x64xf32>
    %39 = vector.broadcast %27 : vector<1x1x64xf32> to vector<4x1x64xf32>
    %40 = arith.mulf %39, %20 : vector<4x1x64xf32>
    %41 = arith.addf %38, %40 : vector<4x1x64xf32>
    %42 = vector.extract_strided_slice %14 {offsets = [0, 0, 0], sizes = [4, 1, 64], strides = [1, 1, 1]} : vector<4x2x64xf32> to vector<4x1x64xf32>
    %43 = tpu.concatenate %42, %34 in 1 : vector<4x1x64xf32>, vector<4x1x64xf32> -> vector<4x2x64xf32>
    %44 = vector.shape_cast %43 : vector<4x2x64xf32> to vector<8x64xf32>
    %45 = vector.extract_strided_slice %15 {offsets = [0, 0, 0], sizes = [4, 1, 64], strides = [1, 1, 1]} : vector<4x2x64xf32> to vector<4x1x64xf32>
    %46 = tpu.concatenate %45, %41 in 1 : vector<4x1x64xf32>, vector<4x1x64xf32> -> vector<4x2x64xf32>
    %47 = vector.shape_cast %46 : vector<4x2x64xf32> to vector<8x64xf32>
    %48 = vector.shape_cast %44 : vector<8x64xf32> to vector<2x4x64xf32>
    %49 = vector.shape_cast %47 : vector<8x64xf32> to vector<2x4x64xf32>
    %50 = vector.shape_cast %3 : vector<8x1xf32> to vector<2x4x1xf32>
    %51 = vector.extract_strided_slice %50 {offsets = [0, 1, 0], sizes = [2, 1, 1], strides = [1, 1, 1]} : vector<2x4x1xf32> to vector<2x1x1xf32>
    %52 = vector.extract_strided_slice %48 {offsets = [0, 1, 0], sizes = [2, 1, 64], strides = [1, 1, 1]} : vector<2x4x64xf32> to vector<2x1x64xf32>
    %53 = vector.broadcast %51 : vector<2x1x1xf32> to vector<2x1x64xf32>
    %54 = arith.mulf %52, %53 : vector<2x1x64xf32>
    %55 = vector.extract_strided_slice %49 {offsets = [0, 1, 0], sizes = [2, 1, 64], strides = [1, 1, 1]} : vector<2x4x64xf32> to vector<2x1x64xf32>
    %56 = vector.broadcast %51 : vector<2x1x1xf32> to vector<2x1x64xf32>
    %57 = arith.mulf %55, %56 : vector<2x1x64xf32>
    %58 = vector.extract_strided_slice %12 {offsets = [0, 0], sizes = [2, 64], strides = [1, 1]} : vector<4x64xf32> to vector<2x64xf32>
    %59 = vector.shape_cast %58 : vector<2x64xf32> to vector<1x2x64xf32>
    %60 = vector.extract_strided_slice %13 {offsets = [0, 0], sizes = [2, 64], strides = [1, 1]} : vector<4x64xf32> to vector<2x64xf32>
    %61 = vector.shape_cast %60 : vector<2x64xf32> to vector<1x2x64xf32>
    %62 = vector.extract_strided_slice %48 {offsets = [0, 2, 0], sizes = [2, 2, 64], strides = [1, 1, 1]} : vector<2x4x64xf32> to vector<2x2x64xf32>
    %63 = vector.broadcast %59 : vector<1x2x64xf32> to vector<2x2x64xf32>
    %64 = vector.broadcast %54 : vector<2x1x64xf32> to vector<2x2x64xf32>
    %65 = arith.mulf %63, %64 : vector<2x2x64xf32>
    %66 = arith.addf %62, %65 : vector<2x2x64xf32>
    %67 = vector.broadcast %61 : vector<1x2x64xf32> to vector<2x2x64xf32>
    %68 = vector.broadcast %57 : vector<2x1x64xf32> to vector<2x2x64xf32>
    %69 = arith.mulf %67, %68 : vector<2x2x64xf32>
    %70 = arith.subf %66, %69 : vector<2x2x64xf32>
    %71 = vector.extract_strided_slice %49 {offsets = [0, 2, 0], sizes = [2, 2, 64], strides = [1, 1, 1]} : vector<2x4x64xf32> to vector<2x2x64xf32>
    %72 = vector.broadcast %59 : vector<1x2x64xf32> to vector<2x2x64xf32>
    %73 = vector.broadcast %57 : vector<2x1x64xf32> to vector<2x2x64xf32>
    %74 = arith.mulf %72, %73 : vector<2x2x64xf32>
    %75 = arith.addf %71, %74 : vector<2x2x64xf32>
    %76 = vector.broadcast %61 : vector<1x2x64xf32> to vector<2x2x64xf32>
    %77 = vector.broadcast %54 : vector<2x1x64xf32> to vector<2x2x64xf32>
    %78 = arith.mulf %76, %77 : vector<2x2x64xf32>
    %79 = arith.addf %75, %78 : vector<2x2x64xf32>
    %80 = vector.extract_strided_slice %48 {offsets = [0, 0, 0], sizes = [2, 2, 64], strides = [1, 1, 1]} : vector<2x4x64xf32> to vector<2x2x64xf32>
    %81 = tpu.concatenate %80, %70 in 1 : vector<2x2x64xf32>, vector<2x2x64xf32> -> vector<2x4x64xf32>
    %82 = vector.shape_cast %81 : vector<2x4x64xf32> to vector<8x64xf32>
    %83 = vector.extract_strided_slice %49 {offsets = [0, 0, 0], sizes = [2, 2, 64], strides = [1, 1, 1]} : vector<2x4x64xf32> to vector<2x2x64xf32>
    %84 = tpu.concatenate %83, %79 in 1 : vector<2x2x64xf32>, vector<2x2x64xf32> -> vector<2x4x64xf32>
    %85 = vector.shape_cast %84 : vector<2x4x64xf32> to vector<8x64xf32>
    %86 = vector.shape_cast %82 : vector<8x64xf32> to vector<1x8x64xf32>
    %87 = vector.shape_cast %85 : vector<8x64xf32> to vector<1x8x64xf32>
    %88 = vector.shape_cast %3 : vector<8x1xf32> to vector<1x8x1xf32>
    %89 = vector.extract_strided_slice %88 {offsets = [0, 3, 0], sizes = [1, 1, 1], strides = [1, 1, 1]} : vector<1x8x1xf32> to vector<1x1x1xf32>
    %90 = vector.extract_strided_slice %86 {offsets = [0, 3, 0], sizes = [1, 1, 64], strides = [1, 1, 1]} : vector<1x8x64xf32> to vector<1x1x64xf32>
    %91 = vector.broadcast %89 : vector<1x1x1xf32> to vector<1x1x64xf32>
    %92 = arith.mulf %90, %91 : vector<1x1x64xf32>
    %93 = vector.extract_strided_slice %87 {offsets = [0, 3, 0], sizes = [1, 1, 64], strides = [1, 1, 1]} : vector<1x8x64xf32> to vector<1x1x64xf32>
    %94 = vector.broadcast %89 : vector<1x1x1xf32> to vector<1x1x64xf32>
    %95 = arith.mulf %93, %94 : vector<1x1x64xf32>
    %96 = vector.shape_cast %12 : vector<4x64xf32> to vector<1x4x64xf32>
    %97 = vector.shape_cast %13 : vector<4x64xf32> to vector<1x4x64xf32>
    %98 = vector.extract_strided_slice %86 {offsets = [0, 4, 0], sizes = [1, 4, 64], strides = [1, 1, 1]} : vector<1x8x64xf32> to vector<1x4x64xf32>
    %99 = vector.broadcast %92 : vector<1x1x64xf32> to vector<1x4x64xf32>
    %100 = arith.mulf %96, %99 : vector<1x4x64xf32>
    %101 = arith.addf %98, %100 : vector<1x4x64xf32>
    %102 = vector.broadcast %95 : vector<1x1x64xf32> to vector<1x4x64xf32>
    %103 = arith.mulf %97, %102 : vector<1x4x64xf32>
    %104 = arith.subf %101, %103 : vector<1x4x64xf32>
    %105 = vector.extract_strided_slice %87 {offsets = [0, 4, 0], sizes = [1, 4, 64], strides = [1, 1, 1]} : vector<1x8x64xf32> to vector<1x4x64xf32>
    %106 = vector.broadcast %95 : vector<1x1x64xf32> to vector<1x4x64xf32>
    %107 = arith.mulf %96, %106 : vector<1x4x64xf32>
    %108 = arith.addf %105, %107 : vector<1x4x64xf32>
    %109 = vector.broadcast %92 : vector<1x1x64xf32> to vector<1x4x64xf32>
    %110 = arith.mulf %97, %109 : vector<1x4x64xf32>
    %111 = arith.addf %108, %110 : vector<1x4x64xf32>
    %112 = vector.extract_strided_slice %86 {offsets = [0, 0, 0], sizes = [1, 4, 64], strides = [1, 1, 1]} : vector<1x8x64xf32> to vector<1x4x64xf32>
    %113 = tpu.concatenate %112, %104 in 1 : vector<1x4x64xf32>, vector<1x4x64xf32> -> vector<1x8x64xf32>
    %114 = vector.shape_cast %113 : vector<1x8x64xf32> to vector<8x64xf32>
    %115 = vector.extract_strided_slice %87 {offsets = [0, 0, 0], sizes = [1, 4, 64], strides = [1, 1, 1]} : vector<1x8x64xf32> to vector<1x4x64xf32>
    %116 = tpu.concatenate %115, %111 in 1 : vector<1x4x64xf32>, vector<1x4x64xf32> -> vector<1x8x64xf32>
    %117 = vector.shape_cast %116 : vector<1x8x64xf32> to vector<8x64xf32>
    %118 = tpu.concatenate %114, %117 in 1 : vector<8x64xf32>, vector<8x64xf32> -> vector<8x128xf32>
    %119 = arith.truncf %118 : vector<8x128xf32> to vector<8x128xbf16>
    %c0_13 = arith.constant 0 : index
    %c0_14 = arith.constant 0 : index
    %120 = vector.load %arg7[%c0_13, %c0_14] : memref<128x32xbf16, #tpu.memory_space<vmem>>, vector<128x32xbf16>
    %cst_15 = arith.constant dense<0.000000e+00> : vector<8x32xf32>
    %121 = tpu.matmul %119, %120, %cst_15 {dimension_numbers = #tpu.dot_dimension_numbers<[1], [0], [0], [1], [0, 0, 1, 1], [], []>} : vector<8x128xbf16>, vector<128x32xbf16>, vector<8x32xf32> -> vector<8x32xf32>
    %c0_16 = arith.constant 0 : index
    %c0_17 = arith.constant 0 : index
    %122 = vector.load %arg8[%c0_16, %c0_17] : memref<1x32xf32, #tpu.memory_space<vmem>>, vector<1x32xf32>
    %123 = vector.broadcast %122 : vector<1x32xf32> to vector<8x32xf32>
    %124 = arith.addf %121, %123 : vector<8x32xf32>
    %125 = arith.addf %124, %1 : vector<8x32xf32>
    %c0_18 = arith.constant 0 : index
    %c0_19 = arith.constant 0 : index
    %126 = vector.load %arg9[%c0_18, %c0_19] : memref<1x32xf32, #tpu.memory_space<vmem>>, vector<1x32xf32>
    %c0_20 = arith.constant 0 : index
    %c0_21 = arith.constant 0 : index
    %127 = vector.load %arg10[%c0_20, %c0_21] : memref<1x32xf32, #tpu.memory_space<vmem>>, vector<1x32xf32>
    %cst_22 = arith.constant dense<0.000000e+00> : vector<8xf32>
    %128 = vector.multi_reduction <add>, %125, %cst_22 [1] : vector<8x32xf32> to vector<8xf32>
    %129 = vector.shape_cast %128 : vector<8xf32> to vector<8x1xf32>
    %cst_23 = arith.constant 3.200000e+01 : f32
    %130 = vector.broadcast %cst_23 : f32 to vector<8x1xf32>
    %131 = arith.divf %129, %130 : vector<8x1xf32>
    %132 = vector.broadcast %131 : vector<8x1xf32> to vector<8x32xf32>
    %133 = arith.subf %125, %132 : vector<8x32xf32>
    %134 = arith.mulf %133, %133 : vector<8x32xf32>
    %cst_24 = arith.constant dense<0.000000e+00> : vector<8xf32>
    %135 = vector.multi_reduction <add>, %134, %cst_24 [1] : vector<8x32xf32> to vector<8xf32>
    %136 = vector.shape_cast %135 : vector<8xf32> to vector<8x1xf32>
    %cst_25 = arith.constant 3.200000e+01 : f32
    %137 = vector.broadcast %cst_25 : f32 to vector<8x1xf32>
    %138 = arith.divf %136, %137 : vector<8x1xf32>
    %139 = vector.broadcast %131 : vector<8x1xf32> to vector<8x32xf32>
    %140 = arith.subf %125, %139 : vector<8x32xf32>
    %cst_26 = arith.constant 9.99999974E-6 : f32
    %141 = vector.broadcast %cst_26 : f32 to vector<8x1xf32>
    %142 = arith.addf %138, %141 : vector<8x1xf32>
    %143 = math.rsqrt %142 : vector<8x1xf32>
    %144 = vector.broadcast %143 : vector<8x1xf32> to vector<8x32xf32>
    %145 = arith.mulf %140, %144 : vector<8x32xf32>
    %146 = vector.broadcast %126 : vector<1x32xf32> to vector<8x32xf32>
    %147 = arith.mulf %145, %146 : vector<8x32xf32>
    %148 = vector.broadcast %127 : vector<1x32xf32> to vector<8x32xf32>
    %149 = arith.addf %147, %148 : vector<8x32xf32>
    %150 = arith.truncf %149 : vector<8x32xf32> to vector<8x32xbf16>
    %c0_27 = arith.constant 0 : index
    %c0_28 = arith.constant 0 : index
    %151 = vector.load %arg11[%c0_27, %c0_28] : memref<32x128xbf16, #tpu.memory_space<vmem>>, vector<32x128xbf16>
    %cst_29 = arith.constant dense<0.000000e+00> : vector<8x128xf32>
    %152 = tpu.matmul %150, %151, %cst_29 {dimension_numbers = #tpu.dot_dimension_numbers<[1], [0], [0], [1], [0, 0, 1, 1], [], []>} : vector<8x32xbf16>, vector<32x128xbf16>, vector<8x128xf32> -> vector<8x128xf32>
    %c0_30 = arith.constant 0 : index
    %c0_31 = arith.constant 0 : index
    %153 = vector.load %arg12[%c0_30, %c0_31] : memref<1x128xf32, #tpu.memory_space<vmem>>, vector<1x128xf32>
    %154 = vector.broadcast %153 : vector<1x128xf32> to vector<8x128xf32>
    %155 = arith.addf %152, %154 : vector<8x128xf32>
    %cst_32 = arith.constant 5.000000e-01 : f32
    %156 = vector.broadcast %cst_32 : f32 to vector<8x128xf32>
    %157 = arith.mulf %156, %155 : vector<8x128xf32>
    %cst_33 = arith.constant 0.707106769 : f32
    %158 = vector.broadcast %cst_33 : f32 to vector<8x128xf32>
    %159 = arith.mulf %155, %158 : vector<8x128xf32>
    %cst_34 = arith.constant 0.000000e+00 : f32
    %160 = vector.broadcast %cst_34 : f32 to vector<8x128xf32>
    %161 = arith.cmpf oge, %159, %160 : vector<8x128xf32>
    %cst_35 = arith.constant 1.000000e+00 : f32
    %cst_36 = arith.constant -1.000000e+00 : f32
    %162 = vector.broadcast %cst_35 : f32 to vector<8x128xf32>
    %163 = vector.broadcast %cst_36 : f32 to vector<8x128xf32>
    %164 = arith.select %161, %162, %163 : vector<8x128xi1>, vector<8x128xf32>
    %165 = math.absf %159 : vector<8x128xf32>
    %cst_37 = arith.constant 0.327591091 : f32
    %166 = vector.broadcast %cst_37 : f32 to vector<8x128xf32>
    %167 = arith.mulf %166, %165 : vector<8x128xf32>
    %cst_38 = arith.constant 1.000000e+00 : f32
    %168 = vector.broadcast %cst_38 : f32 to vector<8x128xf32>
    %169 = arith.addf %168, %167 : vector<8x128xf32>
    %170 = tpu.reciprocal %169 {approx = true} : vector<8x128xf32> -> vector<8x128xf32>
    %cst_39 = arith.constant 1.06140542 : f32
    %171 = vector.broadcast %cst_39 : f32 to vector<8x128xf32>
    %172 = arith.mulf %171, %170 : vector<8x128xf32>
    %cst_40 = arith.constant -1.45315206 : f32
    %173 = vector.broadcast %cst_40 : f32 to vector<8x128xf32>
    %174 = arith.addf %172, %173 : vector<8x128xf32>
    %175 = arith.mulf %174, %170 : vector<8x128xf32>
    %cst_41 = arith.constant 1.42141378 : f32
    %176 = vector.broadcast %cst_41 : f32 to vector<8x128xf32>
    %177 = arith.addf %175, %176 : vector<8x128xf32>
    %178 = arith.mulf %177, %170 : vector<8x128xf32>
    %cst_42 = arith.constant -0.284496725 : f32
    %179 = vector.broadcast %cst_42 : f32 to vector<8x128xf32>
    %180 = arith.addf %178, %179 : vector<8x128xf32>
    %181 = arith.mulf %180, %170 : vector<8x128xf32>
    %cst_43 = arith.constant 0.254829586 : f32
    %182 = vector.broadcast %cst_43 : f32 to vector<8x128xf32>
    %183 = arith.addf %181, %182 : vector<8x128xf32>
    %184 = arith.mulf %183, %170 : vector<8x128xf32>
    %cst_44 = arith.constant 0.000000e+00 : f32
    %185 = vector.broadcast %cst_44 : f32 to vector<8x128xf32>
    %186 = arith.subf %185, %165 : vector<8x128xf32>
    %187 = arith.mulf %186, %165 : vector<8x128xf32>
    %188 = math.exp %187 : vector<8x128xf32>
    %189 = arith.mulf %184, %188 : vector<8x128xf32>
    %cst_45 = arith.constant 1.000000e+00 : f32
    %190 = vector.broadcast %cst_45 : f32 to vector<8x128xf32>
    %191 = arith.subf %190, %189 : vector<8x128xf32>
    %192 = arith.mulf %164, %191 : vector<8x128xf32>
    %cst_46 = arith.constant 1.000000e+00 : f32
    %193 = vector.broadcast %cst_46 : f32 to vector<8x128xf32>
    %194 = arith.addf %193, %192 : vector<8x128xf32>
    %195 = arith.mulf %157, %194 : vector<8x128xf32>
    %196 = arith.truncf %195 : vector<8x128xf32> to vector<8x128xbf16>
    %c0_47 = arith.constant 0 : index
    %c0_48 = arith.constant 0 : index
    %197 = vector.load %arg13[%c0_47, %c0_48] : memref<128x32xbf16, #tpu.memory_space<vmem>>, vector<128x32xbf16>
    %cst_49 = arith.constant dense<0.000000e+00> : vector<8x32xf32>
    %198 = tpu.matmul %196, %197, %cst_49 {dimension_numbers = #tpu.dot_dimension_numbers<[1], [0], [0], [1], [0, 0, 1, 1], [], []>} : vector<8x128xbf16>, vector<128x32xbf16>, vector<8x32xf32> -> vector<8x32xf32>
    %c0_50 = arith.constant 0 : index
    %c0_51 = arith.constant 0 : index
    %199 = vector.load %arg14[%c0_50, %c0_51] : memref<1x32xf32, #tpu.memory_space<vmem>>, vector<1x32xf32>
    %200 = vector.broadcast %199 : vector<1x32xf32> to vector<8x32xf32>
    %201 = arith.addf %198, %200 : vector<8x32xf32>
    %202 = arith.addf %201, %149 : vector<8x32xf32>
    %c0_52 = arith.constant 0 : index
    %c0_53 = arith.constant 0 : index
    %203 = vector.load %arg15[%c0_52, %c0_53] : memref<1x32xf32, #tpu.memory_space<vmem>>, vector<1x32xf32>
    %c0_54 = arith.constant 0 : index
    %c0_55 = arith.constant 0 : index
    %204 = vector.load %arg16[%c0_54, %c0_55] : memref<1x32xf32, #tpu.memory_space<vmem>>, vector<1x32xf32>
    %cst_56 = arith.constant dense<0.000000e+00> : vector<8xf32>
    %205 = vector.multi_reduction <add>, %202, %cst_56 [1] : vector<8x32xf32> to vector<8xf32>
    %206 = vector.shape_cast %205 : vector<8xf32> to vector<8x1xf32>
    %cst_57 = arith.constant 3.200000e+01 : f32
    %207 = vector.broadcast %cst_57 : f32 to vector<8x1xf32>
    %208 = arith.divf %206, %207 : vector<8x1xf32>
    %209 = vector.broadcast %208 : vector<8x1xf32> to vector<8x32xf32>
    %210 = arith.subf %202, %209 : vector<8x32xf32>
    %211 = arith.mulf %210, %210 : vector<8x32xf32>
    %cst_58 = arith.constant dense<0.000000e+00> : vector<8xf32>
    %212 = vector.multi_reduction <add>, %211, %cst_58 [1] : vector<8x32xf32> to vector<8xf32>
    %213 = vector.shape_cast %212 : vector<8xf32> to vector<8x1xf32>
    %cst_59 = arith.constant 3.200000e+01 : f32
    %214 = vector.broadcast %cst_59 : f32 to vector<8x1xf32>
    %215 = arith.divf %213, %214 : vector<8x1xf32>
    %216 = vector.broadcast %208 : vector<8x1xf32> to vector<8x32xf32>
    %217 = arith.subf %202, %216 : vector<8x32xf32>
    %cst_60 = arith.constant 9.99999974E-6 : f32
    %218 = vector.broadcast %cst_60 : f32 to vector<8x1xf32>
    %219 = arith.addf %215, %218 : vector<8x1xf32>
    %220 = math.rsqrt %219 : vector<8x1xf32>
    %221 = vector.broadcast %220 : vector<8x1xf32> to vector<8x32xf32>
    %222 = arith.mulf %217, %221 : vector<8x32xf32>
    %223 = vector.broadcast %203 : vector<1x32xf32> to vector<8x32xf32>
    %224 = arith.mulf %222, %223 : vector<8x32xf32>
    %225 = vector.broadcast %204 : vector<1x32xf32> to vector<8x32xf32>
    %226 = arith.addf %224, %225 : vector<8x32xf32>
    %227 = vector.shape_cast %226 : vector<8x32xf32> to vector<1x8x32xf32>
    %c0_61 = arith.constant 0 : index
    %c0_62 = arith.constant 0 : index
    %c0_63 = arith.constant 0 : index
    %228 = vector.load %arg17[%c0_61, %c0_62, %c0_63] : memref<1x8x32xf32, #tpu.memory_space<vmem>>, vector<1x8x32xf32>
    tpu.vector_store %arg17[%c0_61, %c0_62, %c0_63], %227 {strides = array<i32>} : memref<1x8x32xf32, #tpu.memory_space<vmem>>, vector<1x8x32xf32>,
    return
  }
  func.func @transform_0(%arg0: i32) -> (i32, i32, i32) {
    %c0_i32 = arith.constant 0 : i32
    %c0_i32_0 = arith.constant 0 : i32
    %c0_i32_1 = arith.constant 0 : i32
    return %arg0, %c0_i32, %c0_i32_0 : i32, i32, i32
  }
  func.func @transform_1(%arg0: i32) -> (i32, i32, i32) {
    %c0_i32 = arith.constant 0 : i32
    %c0_i32_0 = arith.constant 0 : i32
    %c0_i32_1 = arith.constant 0 : i32
    return %arg0, %c0_i32, %c0_i32_0 : i32, i32, i32
  }
  func.func @transform_2(%arg0: i32) -> (i32, i32) {
    %c0_i32 = arith.constant 0 : i32
    %c0_i32_0 = arith.constant 0 : i32
    %c0_i32_1 = arith.constant 0 : i32
    return %c0_i32, %c0_i32_0 : i32, i32
  }
  func.func @transform_3(%arg0: i32) -> (i32, i32) {
    %c0_i32 = arith.constant 0 : i32
    %c0_i32_0 = arith.constant 0 : i32
    %c0_i32_1 = arith.constant 0 : i32
    return %c0_i32, %c0_i32_0 : i32, i32
  }
  func.func @transform_4(%arg0: i32) -> (i32, i32) {
    %c0_i32 = arith.constant 0 : i32
    %c0_i32_0 = arith.constant 0 : i32
    %c0_i32_1 = arith.constant 0 : i32
    return %c0_i32, %c0_i32_0 : i32, i32
  }
  func.func @transform_5(%arg0: i32) -> (i32, i32) {
    %c0_i32 = arith.constant 0 : i32
    %c0_i32_0 = arith.constant 0 : i32
    %c0_i32_1 = arith.constant 0 : i32
    return %c0_i32, %c0_i32_0 : i32, i32
  }
  func.func @transform_6(%arg0: i32) -> (i32, i32) {
    %c0_i32 = arith.constant 0 : i32
    %c0_i32_0 = arith.constant 0 : i32
    %c0_i32_1 = arith.constant 0 : i32
    return %c0_i32, %c0_i32_0 : i32, i32
  }
  func.func @transform_7(%arg0: i32) -> (i32, i32) {
    %c0_i32 = arith.constant 0 : i32
    %c0_i32_0 = arith.constant 0 : i32
    %c0_i32_1 = arith.constant 0 : i32
    return %c0_i32, %c0_i32_0 : i32, i32
  }
  func.func @transform_8(%arg0: i32) -> (i32, i32) {
    %c0_i32 = arith.constant 0 : i32
    %c0_i32_0 = arith.constant 0 : i32
    %c0_i32_1 = arith.constant 0 : i32
    return %c0_i32, %c0_i32_0 : i32, i32
  }
  func.func @transform_9(%arg0: i32) -> (i32, i32) {
    %c0_i32 = arith.constant 0 : i32
    %c0_i32_0 = arith.constant 0 : i32
    %c0_i32_1 = arith.constant 0 : i32
    return %c0_i32, %c0_i32_0 : i32, i32
  }
  func.func @transform_10(%arg0: i32) -> (i32, i32) {
    %c0_i32 = arith.constant 0 : i32
    %c0_i32_0 = arith.constant 0 : i32
    %c0_i32_1 = arith.constant 0 : i32
    return %c0_i32, %c0_i32_0 : i32, i32
  }
  func.func @transform_11(%arg0: i32) -> (i32, i32) {
    %c0_i32 = arith.constant 0 : i32
    %c0_i32_0 = arith.constant 0 : i32
    %c0_i32_1 = arith.constant 0 : i32
    return %c0_i32, %c0_i32_0 : i32, i32
  }
  func.func @transform_12(%arg0: i32) -> (i32, i32) {
    %c0_i32 = arith.constant 0 : i32
    %c0_i32_0 = arith.constant 0 : i32
    %c0_i32_1 = arith.constant 0 : i32
    return %c0_i32, %c0_i32_0 : i32, i32
  }
  func.func @transform_13(%arg0: i32) -> (i32, i32) {
    %c0_i32 = arith.constant 0 : i32
    %c0_i32_0 = arith.constant 0 : i32
    %c0_i32_1 = arith.constant 0 : i32
    return %c0_i32, %c0_i32_0 : i32, i32
  }
  func.func @transform_14(%arg0: i32) -> (i32, i32) {
    %c0_i32 = arith.constant 0 : i32
    %c0_i32_0 = arith.constant 0 : i32
    %c0_i32_1 = arith.constant 0 : i32
    return %c0_i32, %c0_i32_0 : i32, i32
  }
  func.func @transform_15(%arg0: i32) -> (i32, i32) {
    %c0_i32 = arith.constant 0 : i32
    %c0_i32_0 = arith.constant 0 : i32
    %c0_i32_1 = arith.constant 0 : i32
    return %c0_i32, %c0_i32_0 : i32, i32
  }
  func.func @transform_16(%arg0: i32) -> (i32, i32, i32) {
    %c0_i32 = arith.constant 0 : i32
    %c0_i32_0 = arith.constant 0 : i32
    %c0_i32_1 = arith.constant 0 : i32
    return %arg0, %c0_i32, %c0_i32_0 : i32, i32, i32
  }
}

</mosaic_0001>

<bundles_post_ra>
// kernel: tpu_custom_call.1
= control target key start
LH: loop header
LB: loop body
LE: loop exit
PB: predicated region body
PF: predicated region fallthrough
CT: control target
= control target key end

     0   :  { %s2395_s0 = inlined_call_operand.vmem [shape: f32[2,8,32], index: 0, kind: input, shape index: {}]   ;;  %s2396_s1 = inlined_call_operand.vmem [shape: f32[2,8,1], index: 1, kind: input, shape index: {}]   ;;  %s2397_s2 = inlined_call_operand.vmem [shape: f32[4,64], index: 2, kind: input, shape index: {}]   ;;  %s2398_s3 = inlined_call_operand.vmem [shape: f32[4,64], index: 3, kind: input, shape index: {}]   ;;  %s2399_s4 = inlined_call_operand.vmem [shape: bf16[32,128], index: 4, kind: input, shape index: {}]   ;;  %s2400_s5 = inlined_call_operand.vmem [shape: f32[1,128], index: 5, kind: input, shape index: {}]   ;;  %s2401_s6 = inlined_call_operand.vmem [shape: bf16[128,32], index: 6, kind: input, shape index: {}]   ;;  %s2402_s7 = inlined_call_operand.vmem [shape: f32[1,32], index: 7, kind: input, shape index: {}]   ;;  %s2403_s8 = inlined_call_operand.vmem [shape: f32[1,32], index: 8, kind: input, shape index: {}]   ;;  %s2404_s9 = inlined_call_operand.vmem [shape: f32[1,32], index: 9, kind: input, shape index: {}]   ;;  %s2405_s10 = inlined_call_operand.vmem [shape: bf16[32,128], index: 10, kind: input, shape index: {}]   ;;  %s2406_s11 = inlined_call_operand.vmem [shape: f32[1,128], index: 11, kind: input, shape index: {}]   ;;  %s2407_s12 = inlined_call_operand.vmem [shape: bf16[128,32], index: 12, kind: input, shape index: {}]   ;;  %s2408_s13 = inlined_call_operand.vmem [shape: f32[1,32], index: 13, kind: input, shape index: {}]   ;;  %s2409_s14 = inlined_call_operand.vmem [shape: f32[1,32], index: 14, kind: input, shape index: {}]   ;;  %s2410_s15 = inlined_call_operand.vmem [shape: f32[1,32], index: 15, kind: input, shape index: {}]   ;;  %s2411_s16 = inlined_call_operand.hbm [shape: f32[2,8,32], index: 16, kind: output, shape index: {}]  }
   0x1   :  { %2413 = sst [smem:[#allocation7_spill]] %s2395_s0 }
   0x2   :  { %2414 = sst [smem:[#allocation8_spill]] %s2396_s1 }
   0x3   :  { %2415 = sst [smem:[#allocation9_spill]] %s2397_s2 }
   0x4   :  { %2416 = sst [smem:[#allocation10_spill]] %s2398_s3 }
   0x5   :  { %2417 = sst [smem:[#allocation11_spill]] %s2399_s4 }
   0x6   :  { %21 = vsyncpa [#allocation3], 0 }
   0x7   :  { %23 = vsyncpa [#allocation3 + $0x1], 0  ;;  %s1961_s21 = smov 0   ;;  %s1963_s22 = smov 0  }
   0x8   :  { %s1965_s23 = smov 0   ;;  %s1967_s24 = smov 0  }
   0x9 LB: > { %2418 = sst [smem:[#allocation5_spill]] %s1861_s23  ;;  %s1982_s25 = sadd.s32 4294967295, %s1865_s24   ;;  %s1865_s24 = sphi %s1967_s24, %s2432_s24   ;;  %s1861_s23 = sphi %s1965_s23, %s2431_s23   ;;  %s1857_s22 = sphi %s1963_s22, %s2430_s22   ;;  %s1853_s21 = sphi %s1961_s21, %s2429_s21  }
   0xa   : > { %s1604_s26 = sadd.s32 4294967294, %s1865_s24   ;;  %s1986_s27 = sadd.s32 1, %s1865_s24  }
   0xb   : > { %s382_s28 = sadd.s32 1, %s1861_s23  ;;  %s379_s29 = ssub.s32 %s1865_s24, %s1986_s27 }
   0xc   : > { %p392_p0 = scmp.ne.s32.totalorder %s1861_s23, %s1857_s22  ;;  %p380_p1 = scmp.eq.s32.totalorder %s379_s29, 0 }
   0xd   : > { %p393_p2 = scmp.eq.s32.totalorder %s1982_s25, 1  ;;  %p398_p3 = scmp.ne.s32.totalorder %s1857_s22, %s1853_s21 }
   0xe   : > { %p399_p4 = scmp.eq.s32.totalorder %s1604_s26, 1  ;;  %p1607_p7 = scmp.ge.s32.totalorder %s1865_s24, 1 }
   0xf   : > { %s1997_s30 = scalar_select %p380_p1, %s1861_s23, %s382_s28  }
  0x10   : > { %p1999_p5 = por %p393_p2, %p392_p0  ;;  %p2003_p6 = por %p399_p4, %p398_p3 }
  0x11   : > { %2419 = sst [smem:[#allocation6_spill]] %s1997_s30  ;;  %p473_p8 = scmp.lt.s32.totalorder %s1865_s24, 3 }
  0x13   : > { %p474_p9 = pnand %p1607_p7, %p473_p8 }
  0x14   : > { %s2422_s4 = sld [smem:[#allocation11_spill]] (!%p474_p9)  ;;  %v612_v1 = vlaneseq (!%p474_p9)  ;;  %v1867_v2 = vmov (!%p474_p9), 0.0   ;;  %vm1868_vm0 = vmmov (!%p474_p9), 0   ;;  %p526_p10 = scmp.lt.s32.totalorder (!%p474_p9), %s1982_s25, 1  ;;  %v1869_v4 = vmov (!%p474_p9), 0  }
  0x15   : > { %477 = sbr.rel (%p474_p9) target bundleno = 2326 (0x916), region = 84  ;;  %1669 = vmatprep.subr.bf16.mxu1 (!%p474_p9), %v1867_v2  ;;  %1697 = vmatprep.subr.bf16.mxu0 (!%p474_p9), %v1867_v2  ;;  %v1870_v5 = vmov (!%p474_p9), 1983009808   ;;  %s2423_s20 = sld [smem:[#allocation7_spill]] (!%p474_p9)  ;;  %vm561_vm1 = vcmask (!%p474_p9), 261120   ;;  %vm935_vm2 = vcmask (!%p474_p9), 1040384  }
  0x16   : > { %1673 = vmatprep.mubr.msk.bf16.mxu1 (!%p474_p9), %vm1868_vm0, %v1867_v2  ;;  %1773 = vset.pattern.permute.xlu1 (!%p474_p9), %v1869_v4  ;;  %v610_v6 = vunpack.c.l.s4 (!%p474_p9), %v1870_v5  ;;  %v2021_v7 = vshrl.u32 (!%p474_p9), %v612_v1, 7  ;;  %s2424_s1 = sld [smem:[#allocation8_spill]] (!%p474_p9)  ;;  %v1871_v17 = vmov (!%p474_p9), 269488144   ;;  %v1611_v21 = vld [vmem:[%s2400_s5] ss:$0 sm:$0xff] (!%p474_p9) }
  0x17   : > { %1772 = vset.pattern.permute.xlu0 (!%p474_p9), %v1869_v4  ;;  %1701 = vmatprep.mubr.msk.bf16.mxu0 (!%p474_p9), %vm1868_vm0, %v1867_v2  ;;  %v652_v18 = vunpack.c.l.s4 (!%p474_p9), %v1871_v17  ;;  %s2425_s3 = sld [smem:[#allocation10_spill]] (!%p474_p9)  ;;  %s2426_s2 = sld [smem:[#allocation9_spill]] (!%p474_p9)  ;;  %v1873_v62 = vmov (!%p474_p9), 839922192   ;;  %vm1074_vm3 = vcmask (!%p474_p9), 1041408   ;;  %vm1132_vm4 = vcmask (!%p474_p9), 1043456  }
  0x18   : > { %v611_v8 = vunpack.c.0.s8 (!%p474_p9), %v610_v6  ;;  %v2059_v31 = vsub.s32 (!%p474_p9), 0, %v2021_v7  ;;  %v949_v63 = vunpack.c.l.s4 (!%p474_p9), %v1873_v62  ;;  %vm1138_vm5 = vcmask (!%p474_p9), 523264  }
  0x19   : > { %v653_v19 = vunpack.c.0.s8 (!%p474_p9), %v652_v18 }
  0x1a   : > { %v1774_v0 = vld [vmem:[%s2422_s4] sm:$0xff] (!%p474_p9)   ;;  %v1775_v3 = vld [vmem:[%s2422_s4 + $0x8] sm:$0xff] (!%p474_p9)   ;;  %v2033_v9 = vsub.s32 (!%p474_p9), %v611_v8, %v2021_v7  ;;  %s523_s4 = sand.u32 (!%p474_p9), 1, %s1857_s22  }
  0x1b   : > { %1670 = vmatpush3.bf16.msra.mxu1 (!%p474_p9), %v1774_v0  ;;  %v2049_v20 = vsub.s32 (!%p474_p9), %v653_v19, %v2021_v7  ;;  %v950_v0 = vunpack.c.0.s8 (!%p474_p9), %v949_v63  ;;  %s1520_s30 = scalar_lea.sflag (!%p474_p9), [#allocation3], %s523_s4 }
  0x1c   : > { %1671 = vmatprep.subr.bf16.mxu1 %v1867_v2  ;;  %s527_s28 = scalar_select %p526_p10, %s1982_s25, 1 }
  0x1d   : > { %v2064_v32 = vld [vmem:[%s2425_s3] sm:$0xf]  ;;  %v2107_v1 = vsub.s32 %v950_v0, %v2021_v7 }
  0x1e   : > { %s1609_s29 = sshll.u32 %s527_s28, 3  ;;  %v2086_v44 = vld [vmem:[%s2426_s2] sm:$0xf] }
  0x1f   : > { %1672 = vmatpush3.bf16.msra.mxu1 %v1775_v3  ;;  %s529_s26 = scalar_lea.vmem %s2423_s20, %s1609_s29  ;;  %s533_s23 = scalar_lea.vmem %s2424_s1, %s1609_s29 }
  0x20   : > { %1677 = vmatprep.subr.bf16.mxu1 %v1867_v2  ;;  %v2036_v10 = vld [vmem:[%s529_s26] sm:$0xff]  ;;  %s1872_s29 = smov 64  }
  0x21   : > { %v536_v11 = vld [vmem:[%s533_s23] sm:$0xff]  ;;  %v537_v12 = vpack.c.bf16 %v2036_v10, %v2036_v10  ;;  %s1608_s23 = sshll.u32 %s523_s4, 3 }
  0x22   : > { %v2040_v13 = vcombine.high %v536_v11, %v536_v11  ;;  %v637_v14 = vrot.slane %v536_v11, %v2033_v9  ;;  %s525_s20 = scalar_lea.vmem [#allocation2], %s1608_s23 }
  0x23   : > { %1674 = vmatmul.mubr.msk.bf16.vlgmr.msra.gmra.mrb[0].mxu1 %vm561_vm1, %v537_v12  ;;  %v2121_v12 = vsub.s32 1, %v2021_v7  ;;  %s1533_s26 = sshll.u32 %s525_s20, 4  ;;  %s2354_s26 = int_to_ptr.vmem [resolvable:$true] %s1533_s26 }
  0x24   : > { %v644_v15 = vrot.slane %v2040_v13, %v2033_v9  ;;  %648 = vperm.xlu0 %1772, %v637_v14   ;;  %1693 = vmatprep.mubr.msk.bf16.mxu1 %vm1868_vm0, %v1867_v2  ;;  %v645_v16 = vcombine.high %v637_v14, %v637_v14  ;;  %s1803_s28 = scalar_lea.vmem %s2354_s26, 128 }
  0x25   : > { %p1804_p11 = scmp.ne.s32.totalorder %s2354_s26, %s1803_s28 }
  0x26   : > { %670 = vperm.xlu1 %1773, %v644_v15   ;;  %v646_v43 = vcombine.high %v644_v15, %v644_v15 }
  0x27   : > { %p1805_p12 = pnand %p1804_p11, %p1999_p5 }
  0x29   : > { %p1806_p13 = pneg %p1805_p12 }
  0x2a   : > { %659 = vperm.xlu1 %1773, %v645_v16  }
  0xa3   : > { %v649_v22 = vpop.permute.xlu0 %648 }
  0xa4   : > { %v657_v26 = vrot.slane %v649_v22, %v2049_v20 }
  0xa5   : > { %v671_v27 = vpop.permute.xlu1 %670 }
  0xa6   : > { %v679_v48 = vrot.slane %v671_v27, %v2049_v20 }
  0xa9   : > { %v660_v36 = vpop.permute.xlu1 %659 }
  0xaa   : > { %v668_v38 = vrot.slane %v660_v36, %v2049_v20 }
  0xf6   : > { %v599_v23 = vpop.f32.mrb[0].mxu1 }
  0xf7   : > { %v600_v24 = vadd.f32 %v1611_v21, %v599_v23  ;;  %v1675_v25 = vpop.f32.mrb[1].mxu1 }
  0xf8   : > { %v602_v28 = vpop.f32.mrb[2].mxu1 }
  0xf9   : > { %v2056_v29 = vrot.slane %v600_v24, %v2033_v9  ;;  %v1676_v30 = vpop.f32.mrb[3].mxu1  ;;  %v608_v46 = vcombine.high %v600_v24, %v600_v24 }
  0xfb   : > { %v691_v33 = vmul.f32 %v657_v26, %v2056_v29  ;;  %v2072_v37 = vcombine.high %v2056_v29, %v2056_v29  ;;  %v2092_v50 = vrot.slane %v608_v46, %v2033_v9 }
  0xfd   : > { %v750_v34 = vrot.slane %v691_v33, %v2059_v31  ;;  %v879_v35 = vmul.f32 %v691_v33, %v2064_v32  ;;  %v2077_v40 = vmul.f32 %v668_v38, %v2072_v37  ;;  %v695_v45 = vmul.f32 %v691_v33, %v2086_v44 }
  0xfe   : > { %v2100_v59 = vmul.f32 %v679_v48, %v2092_v50 }
  0xff   : > { %763 = vrot.lane.b32.xlu0 %v750_v34, %s1872_s29  ;;  %v893_v39 = vrot.slane %v879_v35, %v2033_v9  ;;  %v754_v42 = vrot.slane %v2077_v40, %v2059_v31  ;;  %v709_v47 = vrot.slane %v695_v45, %v2033_v9  ;;  %v696_v4 = vmul.f32 %v2077_v40, %v2086_v44 }
 0x100   : > { %v758_v61 = vrot.slane %v2100_v59, %v2059_v31  ;;  %v881_v36 = vmul.f32 %v2100_v59, %v2064_v32  ;;  %v880_v46 = vmul.f32 %v2077_v40, %v2064_v32 }
 0x101   : > { %v915_v41 = vrot.slane %v893_v39, 7  ;;  %v731_v51 = vrot.slane %v709_v47, 7  ;;  %v716_v8 = vrot.slane %v696_v4, %v2033_v9 }
 0x102   : > { %v907_v45 = vrot.slane %v881_v36, %v2033_v9 }
 0x103   : > { %945 = vperm.xlu0 %1772, %v536_v11   ;;  %v739_v56 = vadd.f32 %v731_v51, %v2056_v29  ;;  %v732_v16 = vrot.slane %v716_v8, 7 }
 0x104   : > { %v917_v47 = vrot.slane %v907_v45, 7 }
 0x105   : > { %v740_v21 = vadd.f32 %v732_v16, %v2072_v37 }
 0x107   : > { %919 = vrot.lane.b32.xlu0 %v915_v41, %s1872_s29 }
 0x10b   : > { %765 = vrot.lane.b32.xlu0 %v754_v42, %s1872_s29 }
 0x10f   : > { %681 = vperm.xlu0 %1772, %v646_v43  }
 0x171   : > { %v764_v49 = vpop.permute.xlu0 %763 }
 0x172   : > { %v775_v52 = vmul.f32 %v764_v49, %v2064_v32  ;;  %v823_v53 = vmul.f32 %v764_v49, %v2086_v44  ;;  %v900_v49 = vrot.slane %v880_v46, %v2033_v9 }
 0x174   : > { %v789_v54 = vrot.slane %v775_v52, %v2033_v9  ;;  %v837_v55 = vrot.slane %v823_v53, %v2033_v9  ;;  %v916_v51 = vrot.slane %v900_v49, 7 }
 0x176   : > { %v811_v57 = vrot.slane %v789_v54, 7  ;;  %v859_v58 = vrot.slane %v837_v55, 7  ;;  %v2160_v55 = vcombine.high %v2092_v50, %v2092_v50 }
 0x178   : > { %v819_v60 = vsub.f32 %v739_v56, %v811_v57  ;;  %863 = vrot.lane.b32.xlu1 %v859_v58, %s1872_s29 }
 0x17a   : > { %v2118_v11 = vsel %vm935_vm2, %v2056_v29, %v819_v60 }
 0x17c   : > { %767 = vrot.lane.b32.xlu1 %v758_v61, %s1872_s29 }
 0x182   : > { %v2109_v3 = vpop.permute.xlu0 %945 }
 0x183   : > { %v954_v5 = vrot.slane %v2109_v3, %v2107_v1 }
 0x185   : > { %v966_v14 = vmul.f32 %v954_v5, %v2118_v11 }
 0x186   : > { %v920_v6 = vpop.permute.xlu0 %919 }
 0x187   : > { %v973_v19 = vrot.slane %v966_v14, %v2121_v12 }
 0x189   : > { %v978_v24 = vmul.f32 %v973_v19, %v2086_v44  ;;  %v1028_v52 = vmul.f32 %v973_v19, %v2064_v32 }
 0x18a   : > { %v766_v15 = vpop.permute.xlu0 %765 }
 0x18b   : > { %v776_v17 = vmul.f32 %v766_v15, %v2064_v32  ;;  %v824_v41 = vmul.f32 %v766_v15, %v2086_v44  ;;  %v1038_v53 = vrot.slane %v1028_v52, %v2033_v9 }
 0x18d   : > { %v796_v18 = vrot.slane %v776_v17, %v2033_v9 }
 0x18e   : > { %v682_v40 = vpop.permute.xlu0 %681 }
 0x18f   : > { %v812_v22 = vrot.slane %v796_v18, 7  ;;  %v690_v54 = vrot.slane %v682_v40, %v2049_v20 }
 0x191   : > { %v820_v23 = vsub.f32 %v740_v21, %v812_v22  ;;  %v694_v58 = vmul.f32 %v690_v54, %v2160_v55 }
 0x193   : > { %v937_v25 = vsel %vm935_vm2, %v2072_v37, %v820_v23  ;;  %v762_v63 = vrot.slane %v694_v58, %v2059_v31  ;;  %v697_v31 = vmul.f32 %v2100_v59, %v2086_v44 }
 0x194   : > { %v980_v26 = vadd.f32 %v978_v24, %v937_v25  ;;  %v698_v24 = vmul.f32 %v694_v58, %v2086_v44 }
 0x195   : > { %v723_v18 = vrot.slane %v697_v31, %v2033_v9 }
 0x196   : > { %v730_v59 = vrot.slane %v698_v24, %v2033_v9  ;;  %v1781_v24 = vld [vmem:[%s2401_s6 + $0x20] sm:$0xff]  }
 0x197   : > { %v733_v19 = vrot.slane %v723_v18, 7 }
 0x1ea   : > { %v864_v27 = vpop.permute.xlu1 %863 }
 0x1eb   : > { %v875_v28 = vadd.f32 %v864_v27, %v2056_v29 }
 0x1ed   : > { %v931_v30 = vadd.f32 %v920_v6, %v875_v28 }
 0x1ee   : > { %v768_v33 = vpop.permute.xlu1 %767 }
 0x1ef   : > { %v825_v34 = vmul.f32 %v768_v33, %v2086_v44  ;;  %v2135_v35 = vsel %vm935_vm2, %v2056_v29, %v931_v30  ;;  %v844_v29 = vrot.slane %v824_v41, %v2033_v9  ;;  %v777_v16 = vmul.f32 %v768_v33, %v2064_v32 }
 0x1f0   : > { %v968_v38 = vmul.f32 %v954_v5, %v2135_v35 }
 0x1f1   : > { %v851_v39 = vrot.slane %v825_v34, %v2033_v9  ;;  %v860_v48 = vrot.slane %v844_v29, 7 }
 0x1f2   : > { %v985_v42 = vrot.slane %v968_v38, %v2121_v12 }
 0x1f3   : > { %v861_v43 = vrot.slane %v851_v39, 7  ;;  %v734_v39 = vrot.slane %v730_v59, 7 }
 0x1f4   : > { %992 = vrot.lane.b32.xlu1 %v985_v42, %s1872_s29 }
 0x1f5   : > { %867 = vrot.lane.b32.xlu0 %v861_v43, %s1872_s29 }
 0x1f8   : > { %956 = vperm.xlu1 %1773, %v2040_v13  }
 0x1f9   : > { %923 = vrot.lane.b32.xlu0 %v917_v47, %s1872_s29 }
 0x1fc   : > { %865 = vrot.lane.b32.xlu1 %v860_v48, %s1872_s29 }
 0x200   : > { %921 = vrot.lane.b32.xlu1 %v916_v51, %s1872_s29  ;;  %v882_v51 = vmul.f32 %v694_v58, %v2064_v32 }
 0x202   : > { %v914_v58 = vrot.slane %v882_v51, %v2033_v9 }
 0x204   : > { %1046 = vrot.lane.b32.xlu1 %v1038_v53, %s1872_s29 }
 0x266   : > { %v993_v13 = vpop.permute.xlu1 %992 }
 0x267   : > { %v998_v56 = vmul.f32 %v993_v13, %v2064_v32  ;;  %v1002_v57 = vmul.f32 %v993_v13, %v2086_v44  ;;  %v868_v62 = vpop.permute.xlu0 %867 }
 0x268   : > { %v877_v0 = vadd.f32 %v868_v62, %v2092_v50 }
 0x269   : > { %v1000_v60 = vsub.f32 %v980_v26, %v998_v56  ;;  %v1012_v61 = vrot.slane %v1002_v57, %v2033_v9  ;;  %v741_v26 = vadd.f32 %v733_v19, %v2092_v50  ;;  %v1103_v56 = vsub.s32 3, %v2021_v7 }
 0x26b   : > { %1020 = vrot.lane.b32.xlu0 %v1012_v61, %s1872_s29  ;;  %v924_v20 = vpop.permute.xlu0 %923  ;;  %v1056_v43 = vcombine.low %v1000_v60, %v1000_v60 }
 0x26c   : > { %v933_v4 = vadd.f32 %v924_v20, %v877_v0  ;;  %v1777_v0 = vld [vmem:[%s2401_s6] sm:$0xff]  }
 0x26d   : > { %v1063_v52 = vrot.slane %v1056_v43, %v2033_v9  ;;  %1678 = vmatpush3.bf16.msra.mxu1 %v1777_v0 }
 0x26e   : > { %v2173_v8 = vsel %vm935_vm2, %v2092_v50, %v933_v4  ;;  %1679 = vmatprep.subr.bf16.mxu1 %v1867_v2 }
 0x26f   : > { %769 = vrot.lane.b32.xlu0 %v762_v63, %s1872_s29  ;;  %v918_v63 = vrot.slane %v914_v58, 7 }
 0x277   : > { %v957_v5 = vpop.permute.xlu1 %956 }
 0x278   : > { %v965_v6 = vrot.slane %v957_v5, %v2107_v1  ;;  %v803_v1 = vrot.slane %v777_v16, %v2033_v9  ;;  %v1779_v16 = vld [vmem:[%s2401_s6 + $0x10] sm:$0xff]  }
 0x27a   : > { %v969_v14 = vmul.f32 %v965_v6, %v2173_v8  ;;  %v813_v23 = vrot.slane %v803_v1, 7 }
 0x27b   : > { %v866_v17 = vpop.permute.xlu1 %865 }
 0x27c   : > { %v989_v15 = vrot.slane %v969_v14, %v2121_v12  ;;  %v876_v22 = vadd.f32 %v866_v17, %v2072_v37  ;;  %v821_v27 = vsub.f32 %v741_v26, %v813_v23  ;;  %v1783_v26 = vld [vmem:[%s2401_s6 + $0x30] sm:$0xff]  }
 0x27e   : > { %994 = vrot.lane.b32.xlu1 %v989_v15, %s1872_s29  ;;  %v938_v36 = vsel %vm935_vm2, %v2092_v50, %v821_v27  ;;  %v742_v50 = vadd.f32 %v734_v39, %v2160_v55  ;;  %v1784_v27 = vld [vmem:[%s2401_s6 + $0x38] sm:$0xff]  }
 0x27f   : > { %v922_v21 = vpop.permute.xlu1 %921  ;;  %v967_v41 = vmul.f32 %v965_v6, %v938_v36 }
 0x280   : > { %v932_v25 = vadd.f32 %v922_v21, %v876_v22  ;;  %v1780_v21 = vld [vmem:[%s2401_s6 + $0x18] sm:$0xff]  }
 0x281   : > { %v977_v49 = vrot.slane %v967_v41, %v2121_v12 }
 0x282   : > { %v941_v30 = vsel %vm935_vm2, %v2072_v37, %v932_v25  ;;  %v1782_v25 = vld [vmem:[%s2401_s6 + $0x28] sm:$0xff]  }
 0x283   : > { %v1047_v34 = vpop.permute.xlu1 %1046  ;;  %v979_v12 = vmul.f32 %v977_v49, %v2086_v44  ;;  %v1029_v7 = vmul.f32 %v977_v49, %v2064_v32 }
 0x285   : > { %v1045_v14 = vrot.slane %v1029_v7, %v2033_v9  ;;  %v1785_v7 = vld [vmem:[%s2405_s10] sm:$0xff]  }
 0x286   : > { %1698 = vmatpush3.bf16.msra.mxu0 %v1785_v7 }
 0x287   : > { %1699 = vmatprep.subr.bf16.mxu0 %v1867_v2 }
 0x2dd   : > { %v1021_v28 = vpop.permute.xlu0 %1020 }
 0x2de   : > { %v1026_v33 = vadd.f32 %v1021_v28, %v941_v30 }
 0x2e0   : > { %v1052_v38 = vadd.f32 %v1047_v34, %v1026_v33 }
 0x2e1   : > { %v770_v42 = vpop.permute.xlu0 %769 }
 0x2e2   : > { %v1079_v45 = vcombine.low %v1052_v38, %v1052_v38  ;;  %v778_v29 = vmul.f32 %v770_v42, %v2064_v32  ;;  %v826_v46 = vmul.f32 %v770_v42, %v2086_v44 }
 0x2e4   : > { %v1086_v47 = vrot.slane %v1079_v45, %v2033_v9  ;;  %v810_v48 = vrot.slane %v778_v29, %v2033_v9  ;;  %v858_v37 = vrot.slane %v826_v46, %v2033_v9 }
 0x2e6   : > { %v814_v53 = vrot.slane %v810_v48, 7  ;;  %v862_v40 = vrot.slane %v858_v37, 7  ;;  %v2202_v54 = vsel %vm1074_vm3, %v2135_v35, %v1086_v47  ;;  %v2214_v35 = vsel %vm1074_vm3, %v2118_v11, %v1063_v52  ;;  %v1778_v11 = vld [vmem:[%s2401_s6 + $0x8] sm:$0xff]  }
 0x2e7   : > { %v1100_v13 = vmul.f32 %v2202_v54, %v2109_v3  ;;  %v1099_v20 = vmul.f32 %v2214_v35, %v2109_v3  ;;  %1680 = vmatpush3.bf16.msra.mxu1 %v1778_v11 }
 0x2e8   : > { %v822_v57 = vsub.f32 %v742_v50, %v814_v53  ;;  %869 = vrot.lane.b32.xlu1 %v862_v40, %s1872_s29  ;;  %1681 = vmatprep.subr.bf16.mxu1 %v1867_v2 }
 0x2e9   : > { %v1110_v60 = vrot.slane %v1100_v13, %v1103_v56  ;;  %v1104_v15 = vrot.slane %v1099_v20, %v1103_v56  ;;  %v1786_v20 = vld [vmem:[%s2405_s10 + $0x8] sm:$0xff]  }
 0x2ea   : > { %v939_v61 = vsel %vm935_vm2, %v2160_v55, %v822_v57  ;;  %1700 = vmatpush3.bf16.msra.mxu0 %v1786_v20 }
 0x2eb   : > { %1112 = vrot.lane.b32.xlu0 %v1110_v60, %s1872_s29  ;;  %v981_v62 = vadd.f32 %v979_v12, %v939_v61  ;;  %v1123_v18 = vmul.f32 %v1104_v15, %v2064_v32  ;;  %v1105_v19 = vmul.f32 %v1104_v15, %v2086_v44  ;;  %1682 = vmatpush3.bf16.msra.mxu1 %v1779_v16  ;;  %v1787_v16 = vld [vmem:[%s2407_s12] sm:$0xff]  }
 0x2ec   : > { %1683 = vmatprep.subr.bf16.mxu1 %v1867_v2  ;;  %1705 = vmatprep.subr.bf16.mxu0 %v1867_v2 }
 0x2ef   : > { %925 = vrot.lane.b32.xlu0 %v918_v63, %s1872_s29  ;;  %1684 = vmatpush3.bf16.msra.mxu1 %v1780_v21  ;;  %v1792_v21 = vld [vmem:[%s2407_s12 + $0x28] sm:$0xff]  }
 0x2f0   : > { %v995_v4 = vpop.permute.xlu1 %994  ;;  %1685 = vmatprep.subr.bf16.mxu1 %v1867_v2 }
 0x2f1   : > { %v999_v5 = vmul.f32 %v995_v4, %v2064_v32  ;;  %v1003_v6 = vmul.f32 %v995_v4, %v2086_v44 }
 0x2f3   : > { %v1001_v3 = vsub.f32 %v981_v62, %v999_v5  ;;  %v1019_v31 = vrot.slane %v1003_v6, %v2033_v9  ;;  %1048 = vrot.lane.b32.xlu0 %v1045_v14, %s1872_s29  ;;  %1686 = vmatpush3.bf16.msra.mxu1 %v1781_v24  ;;  %v1624_v5 = vld [vmem:[%s2403_s8] ss:$0 sm:$0xff] }
 0x2f4   : > { %1687 = vmatprep.subr.bf16.mxu1 %v1867_v2  ;;  %v1625_v14 = vld [vmem:[%s2404_s9] ss:$0 sm:$0xff] }
 0x2f5   : > { %v1064_v17 = vcombine.low %v1001_v3, %v1001_v3  ;;  %1022 = vrot.lane.b32.xlu1 %v1019_v31, %s1872_s29  ;;  %v1626_v24 = vld [vmem:[%s2406_s11] ss:$0 sm:$0xff] }
 0x2f7   : > { %v1071_v1 = vrot.slane %v1064_v17, %v2033_v9  ;;  %1125 = vrot.lane.b32.xlu0 %v1123_v18, %s1872_s29  ;;  %1688 = vmatpush3.bf16.msra.mxu1 %v1782_v25  ;;  %v1788_v17 = vld [vmem:[%s2407_s12 + $0x8] sm:$0xff]   ;;  %v1789_v18 = vld [vmem:[%s2407_s12 + $0x10] sm:$0xff]  }
 0x2f8   : > { %1689 = vmatprep.subr.bf16.mxu1 %v1867_v2 }
 0x2f9   : > { %v1076_v22 = vsel %vm1074_vm3, %v938_v36, %v1071_v1  ;;  %v1790_v1 = vld [vmem:[%s2407_s12 + $0x18] sm:$0xff]  }
 0x2fa   : > { %v1106_v23 = vadd.f32 %v1105_v19, %v1076_v22  ;;  %v1791_v19 = vld [vmem:[%s2407_s12 + $0x20] sm:$0xff]   ;;  %v1793_v22 = vld [vmem:[%s2407_s12 + $0x30] sm:$0xff]  }
 0x2fb   : > { %1690 = vmatpush3.bf16.msra.mxu1 %v1783_v26 }
 0x2fc   : > { %1691 = vmatprep.subr.bf16.mxu1 %v1867_v2 }
 0x2ff   : > { %1692 = vmatpush3.bf16.msra.mxu1 %v1784_v27 }
 0x35a   : > { %v870_v34 = vpop.permute.xlu1 %869 }
 0x35b   : > { %v878_v38 = vadd.f32 %v870_v34, %v2160_v55 }
 0x35d   : > { %v1113_v59 = vpop.permute.xlu0 %1112 }
 0x35e   : > { %v1115_v28 = vmul.f32 %v1113_v59, %v2064_v32  ;;  %v1117_v30 = vmul.f32 %v1113_v59, %v2086_v44 }
 0x360   : > { %v1116_v33 = vsub.f32 %v1106_v23, %v1115_v28  ;;  %1119 = vrot.lane.b32.xlu1 %v1117_v30, %s1872_s29  ;;  %v1794_v23 = vld [vmem:[%s2407_s12 + $0x38] sm:$0xff]   ;;  %s1642_s29 = sshll.u32 %s1982_s25, 7  ;;  %s1875_s25 = smov [#allocation2]  }
 0x361   : > { %v926_v36 = vpop.permute.xlu0 %925  ;;  %s2352_s3 = scalar_lea.hbm %s2411_s16, %s1642_s29  ;;  %s1807_s23 = sshll.u32 %s1875_s25, 4  ;;  %s1808_s23 = int_to_ptr.vmem [resolvable:$false] %s1807_s23 }
 0x362   : > { %v934_v39 = vadd.f32 %v926_v36, %v878_v38  ;;  %v1130_v49 = vcombine.low %v1116_v33, %v1116_v33  ;;  %s1809_s18 = scalar_lea.vmem %s1808_s23, 256  ;;  %p1810_p0 = scmp.lt.s32.totalorder %s2354_s26, %s1808_s23 }
 0x363   : > { %p1811_p1 = scmp.lt.s32.totalorder %s1809_s18, %s1803_s28 }
 0x364   : > { %v943_v42 = vsel %vm935_vm2, %v2160_v55, %v934_v39  ;;  %v1133_v52 = vsel %vm1132_vm4, %v2214_v35, %v1130_v49 }
 0x365   : > { %v1049_v45 = vpop.permute.xlu0 %1048  ;;  %p1812_p2 = por %p1811_p1, %p1810_p0 }
 0x367   : > { %v1023_v41 = vpop.permute.xlu1 %1022  ;;  %p1813_p3 = pnand %p1812_p2, %p1806_p13 }
 0x368   : > { %v1027_v43 = vadd.f32 %v1023_v41, %v943_v42 }
 0x369   : > { %v1126_v37 = vpop.permute.xlu0 %1125 }
 0x36a   : > { %v1053_v29 = vadd.f32 %v1049_v45, %v1027_v43 }
 0x36c   : > { %v1087_v46 = vcombine.low %v1053_v29, %v1053_v29 }
 0x36e   : > { %v1094_v32 = vrot.slane %v1087_v46, %v2033_v9  ;;  %v1615_v9 = vld [vmem:[%s2402_s7] ss:$0 sm:$0xff] }
 0x370   : > { %v1098_v44 = vsel %vm1074_vm3, %v2173_v8, %v1094_v32 }
 0x3d2   : > { %v1120_v47 = vpop.permute.xlu1 %1119 }
 0x3d3   : > { %v1122_v48 = vadd.f32 %v1120_v47, %v1098_v44 }
 0x3d5   : > { %v1128_v50 = vadd.f32 %v1126_v37, %v1122_v48 }
 0x3d7   : > { %v1135_v51 = vcombine.low %v1128_v50, %v1128_v50 }
 0x3d9   : > { %v1137_v55 = vsel %vm1132_vm4, %v2202_v54, %v1135_v51  ;;  %v1874_v51 = vmov -1.0  }
 0x3da   : > { %v1139_v53 = vsel %vm1138_vm5, %v1133_v52, %v1137_v55 }
 0x3db   : > { %v1140_v40 = vpack.c.bf16 %v1139_v53, %v1139_v53 }
 0x3dd   : > { %1694 = vmatmul.mubr.bf16.vlgmr.msra.gmra.mrb[4].mxu1 %v1140_v40 }
 0x4b0   : > { %v1246_v13 = vpop.f32.mrb[4].mxu1 }
 0x4b1   : > { %v1247_v8 = vadd.f32 %v1615_v9, %v1246_v13  ;;  %v1695_v56 = vpop.f32.mrb[5].mxu1 }
 0x4b2   : > { %v1249_v57 = vpop.f32.mrb[6].mxu1 }
 0x4b3   : > { %v1696_v12 = vpop.f32.mrb[7].mxu1  ;;  %v1252_v60 = vadd.f32 %v1247_v8, %v2036_v10  ;;  %v1630_v8 = vld [vmem:[%s2408_s13] ss:$0 sm:$0xff] }
 0x4b5   : > { %v1255_v58 = vsel %vm561_vm1, %v1252_v60, 0.0 }
 0x4b6   : > { %1256 = vadd.xlane.f32.xlu1 %v1255_v58 }
 0x543   : > { %v1257_v61 = vpop.xlane.xlu1 %1256 }
 0x544   : > { %v1259_v35 = vmul.f32 0.03125, %v1257_v61 }
 0x546   : > { %v1260_v54 = vsub.f32 %v1252_v60, %v1259_v35 }
 0x548   : > { %v1261_v62 = vmul.f32 %v1260_v54, %v1260_v54 }
 0x54a   : > { %v1262_v63 = vsel %vm561_vm1, %v1261_v62, 0.0 }
 0x54b   : > { %1263 = vadd.xlane.f32.xlu0 %v1262_v63 }
 0x5d8   : > { %v1264_v10 = vpop.xlane.xlu0 %1263 }
 0x5d9   : > { %v1265_v0 = vmul.f32 0.03125, %v1264_v10 }
 0x5db   : > { %v1266_v4 = vadd.f32 1e-05, %v1265_v0 }
 0x5dd   : > { %1795 = vrsqrt.f32 %v1266_v4 }
 0x5e7   : > { %v1796_v11 = vpop.eup %1795 }
 0x5e8   : > { %v1268_v6 = vmul.f32 %v1796_v11, %v1260_v54 }
 0x5ea   : > { %v1275_v15 = vmul.f32 %v1624_v5, %v1268_v6  ;;  %v1639_v5 = vld [vmem:[%s2409_s14] ss:$0 sm:$0xff] }
 0x5ec   : > { %v2294_v3 = vadd.f32 %v1625_v14, %v1275_v15  ;;  %v1640_v14 = vld [vmem:[%s2410_s15] ss:$0 sm:$0xff] }
 0x5ee   : > { %v1283_v31 = vpack.c.bf16 %v2294_v3, %v2294_v3 }
 0x5f0   : > { %1702 = vmatmul.mubr.msk.bf16.vlgmr.msra.gmra.mrb[0].mxu0 %vm561_vm1, %v1283_v31 }
 0x5f1   : > { %1721 = vmatprep.mubr.msk.bf16.mxu0 %vm1868_vm0, %v1867_v2  ;;  %1706 = vmatpush3.bf16.msra.mxu0 %v1787_v16 }
 0x5f2   : > { %1707 = vmatprep.subr.bf16.mxu0 %v1867_v2 }
 0x5f5   : > { %1708 = vmatpush3.bf16.msra.mxu0 %v1788_v17 }
 0x5f6   : > { %1709 = vmatprep.subr.bf16.mxu0 %v1867_v2 }
 0x5f9   : > { %1710 = vmatpush3.bf16.msra.mxu0 %v1789_v18 }
 0x5fa   : > { %1711 = vmatprep.subr.bf16.mxu0 %v1867_v2 }
 0x5fd   : > { %1712 = vmatpush3.bf16.msra.mxu0 %v1790_v1 }
 0x5fe   : > { %1713 = vmatprep.subr.bf16.mxu0 %v1867_v2 }
 0x601   : > { %1714 = vmatpush3.bf16.msra.mxu0 %v1791_v19 }
 0x602   : > { %1715 = vmatprep.subr.bf16.mxu0 %v1867_v2 }
 0x605   : > { %1716 = vmatpush3.bf16.msra.mxu0 %v1792_v21 }
 0x606   : > { %1717 = vmatprep.subr.bf16.mxu0 %v1867_v2 }
 0x609   : > { %1718 = vmatpush3.bf16.msra.mxu0 %v1793_v22 }
 0x60a   : > { %1719 = vmatprep.subr.bf16.mxu0 %v1867_v2 }
 0x60d   : > { %1720 = vmatpush3.bf16.msra.mxu0 %v1794_v23 }
 0x6c3   : > { %v1344_v25 = vpop.f32.mrb[0].mxu0 }
 0x6c4   : > { %v1345_v26 = vadd.f32 %v1626_v24, %v1344_v25  ;;  %v1703_v27 = vpop.f32.mrb[1].mxu0 }
 0x6c5   : > { %v1347_v59 = vpop.f32.mrb[2].mxu0 }
 0x6c6   : > { %v1351_v28 = vmul.f32 0.70710677, %v1345_v26  ;;  %v1704_v30 = vpop.f32.mrb[3].mxu0  ;;  %v1350_v53 = vmul.f32 0.5, %v1345_v26 }
 0x6c8   : > { %v1354_v33 = vand.u32 2147483647, %v1351_v28  ;;  %vm1352_vm6 = vcmp.ge.f32.partialorder %v1351_v28, 0.0 }
 0x6c9   : > { %v1353_v52 = vsel %vm1352_vm6, 1.0, %v1874_v51 }
 0x6ca   : > { %v1355_v34 = vmul.f32 0.3275911, %v1354_v33  ;;  %v1367_v2 = vsub.f32 0.0, %v1354_v33 }
 0x6cc   : > { %v1356_v36 = vadd.f32 1.0, %v1355_v34  ;;  %v1368_v39 = vmul.f32 %v1367_v2, %v1354_v33 }
 0x6ce   : > { %1797 = vrcp.f32 %v1356_v36  ;;  %v1369_v43 = vmul.f32 1.442695, %v1368_v39 }
 0x6d0   : > { %1799 = vpow2.f32 %v1369_v43 }
 0x6d8   : > { %v1798_v38 = vpop.eup %1797 }
 0x6d9   : > { %v1358_v41 = vmul.f32 1.0614054, %v1798_v38 }
 0x6da   : > { %v1800_v37 = vpop.eup %1799 }
 0x6db   : > { %v1359_v42 = vadd.f32 -1.4531521, %v1358_v41 }
 0x6dd   : > { %v1360_v45 = vmul.f32 %v1798_v38, %v1359_v42 }
 0x6df   : > { %v1361_v29 = vadd.f32 1.4214138, %v1360_v45 }
 0x6e1   : > { %v1362_v46 = vmul.f32 %v1798_v38, %v1361_v29 }
 0x6e3   : > { %v1363_v32 = vadd.f32 -0.28449672, %v1362_v46 }
 0x6e5   : > { %v1364_v47 = vmul.f32 %v1798_v38, %v1363_v32 }
 0x6e7   : > { %v1365_v44 = vadd.f32 0.2548296, %v1364_v47 }
 0x6e9   : > { %v1366_v48 = vmul.f32 %v1798_v38, %v1365_v44 }
 0x6eb   : > { %v1371_v49 = vmul.f32 %v1800_v37, %v1366_v48 }
 0x6ed   : > { %v1372_v50 = vsub.f32 1.0, %v1371_v49 }
 0x6ef   : > { %v1373_v55 = vmul.f32 %v1372_v50, %v1353_v52 }
 0x6f1   : > { %v1374_v40 = vadd.f32 1.0, %v1373_v55 }
 0x6f3   : > { %v1375_v9 = vmul.f32 %v1374_v40, %v1350_v53 }
 0x6f5   : > { %v1376_v13 = vpack.c.bf16 %v1375_v9, %v1375_v9 }
 0x6f7   : > { %1722 = vmatmul.mubr.bf16.vlgmr.msra.gmra.mrb[4].mxu0 %v1376_v13 }
 0x7ca   : > { %v1482_v56 = vpop.f32.mrb[4].mxu0 }
 0x7cb   : > { %v1483_v57 = vadd.f32 %v1630_v8, %v1482_v56  ;;  %v1723_v12 = vpop.f32.mrb[5].mxu0 }
 0x7cc   : > { %v1485_v60 = vpop.f32.mrb[6].mxu0 }
 0x7cd   : > { %v1724_v58 = vpop.f32.mrb[7].mxu0  ;;  %v1488_v61 = vadd.f32 %v1483_v57, %v2294_v3 }
 0x7cf   : > { %v1491_v35 = vsel %vm561_vm1, %v1488_v61, 0.0 }
 0x7d0   : > { %1492 = vadd.xlane.f32.xlu0 %v1491_v35 }
 0x85d   : > { %v1493_v54 = vpop.xlane.xlu0 %1492 }
 0x85e   : > { %v1494_v62 = vmul.f32 0.03125, %v1493_v54 }
 0x860   : > { %v1495_v63 = vsub.f32 %v1488_v61, %v1494_v62 }
 0x862   : > { %v1496_v7 = vmul.f32 %v1495_v63, %v1495_v63 }
 0x864   : > { %v1497_v20 = vsel %vm561_vm1, %v1496_v7, 0.0 }
 0x865   : > { %1498 = vadd.xlane.f32.xlu1 %v1497_v20 }
 0x8f2   : > { %v1499_v10 = vpop.xlane.xlu1 %1498 }
 0x8f3   : > { %v1500_v0 = vmul.f32 0.03125, %v1499_v10 }
 0x8f5   : > { %v1501_v4 = vadd.f32 1e-05, %v1500_v0 }
 0x8f7   : > { %1801 = vrsqrt.f32 %v1501_v4 }
 0x901   : > { %v1802_v11 = vpop.eup %1801 }
 0x902   : > { %v1503_v6 = vmul.f32 %v1802_v11, %v1495_v63 }
 0x904   : > { %v1510_v15 = vmul.f32 %v1639_v5, %v1503_v6 }
 0x906   : > { %v1517_v3 = vadd.f32 %v1640_v14, %v1510_v15 }
 0x908   : > { %1518 = vst.msk [vmem:[%s525_s20] sm:$0xff] %vm561_vm1, %v1517_v3 }
 0x909   : > { %1816 = shalt.err (!%p1813_p3)
}
 0x90a   : > { %s1817_s1 = scalar_lea.hbm %s2352_s3, 128  ;;  %s1821_s19 = scalar_lea.hbm %s2411_s16, 256 }
 0x90b   : > { %p1818_p4 = scmp.ne.s32.totalorder %s2352_s3, %s1817_s1  ;;  %p1822_p9 = scmp.lt.u32.totalorder %s2352_s3, %s2411_s16 }
 0x90c   : > { %p1823_p10 = scmp.lt.u32.totalorder %s1821_s19, %s1817_s1  ;;  %p1825_p12 = scmp.lt.u32.totalorder %s1817_s1, %s2352_s3 }
 0x90d   : > { %p1819_p7 = pnand %p1818_p4, %p1999_p5 }
 0x90e   : > { %p1824_p11 = por %p1823_p10, %p1822_p9 }
 0x90f   : > { %p1820_p8 = pneg %p1819_p7 }
 0x910   : > { %p1826_p13 = por %p1825_p12, %p1824_p11 }
 0x912   : > { %p1827_p0 = pnand %p1826_p13, %p1820_p8 }
 0x914   : > { %1830 = shalt.err (!%p1827_p0)
}
 0x915   : > { %1725 = dma.vmem_to_hbm [thread:$0]  (%p1999_p5), %s2354_s26, 128, %s2352_s3, %s1520_s30  }
 0x916 PF: > { %p1731_p1 = scmp.ge.s32.totalorder %s1865_s24, 2  ;;  %s1545_s28 = sand.u32 1, %s1853_s21  }
 0x917   : > { %s1546_s25 = scalar_lea.sflag [#allocation3], %s1545_s28 }
 0x918   : > { %p1728_p2 = pnand %p1731_p1, %p2003_p6 }
 0x91a   : > { %1848 = dma.done.wait (!%p1728_p2), %s1546_s25, 128  }
 0x91b   : > { %1850 = vsyncadd (!%p1728_p2), %s1546_s25, 4294967168  ;;  %s2427_s23 = sld [smem:[#allocation5_spill]]  ;;  %s2428_s18 = sld [smem:[#allocation6_spill]] }
 0x91c   : > { %p26_p3 = scmp.ge.s32.totalorder %s1986_s27, 4   ;;  %s2429_s21 = smov %s1857_s22 }
 0x91d   : > { %s2432_s24 = smov %s1986_s27 }
 0x91e   :  { %28 = sbr.rel (!%p26_p3) target bundleno = 9 (0x9), region = 122 }
 0x921   : > { %s2430_s22 = smov %s2427_s23  ;;  %s2431_s23 = smov %s2428_s18 }
 0x925   :  { %1551 = vsyncpa [#allocation3], 1 }
 0x926   :  { %1553 = vsyncpa [#allocation3 + $0x1], 1 }

</bundles_post_ra>
